<compile_context>
chip_gen: v7x
topology: tpu7x:2x2x1
jax: 0.10.0
libtpu: 0.0.40
codegen_flags: <defaults>
</compile_context>

<pallas_src>
import functools
import math

import jax
import jax.numpy as jnp
from jax.experimental import pallas as pl
from jax.experimental.pallas import tpu as pltpu

STAGE_NUM = 3


def emau_kernel(x_ref, w1_ref, b1_ref, w2_ref, b2_ref, mu0_ref,
                out_ref, mu_out_ref,
                x1_scr, z_scr, mu_prev, mu_acc):
    """Grid step = (image b, pass s, N-tile t); all tensors channels-first."""
    s = pl.program_id(1)
    t = pl.program_id(2)
    n_tiles = pl.num_programs(2)

    # ---- pass s == 0: conv1 (1x1 conv + bias) for this N-tile -> bf16 scratch
    @pl.when(s == 0)
    def _():
        x1 = jnp.dot(w1_ref[...], x_ref[0],
                     preferred_element_type=jnp.float32) + b1_ref[...]
        x1_scr[t] = x1.astype(jnp.bfloat16)

    # ---- per-image / per-stage init of the EM state (first tile of a stage)
    @pl.when(jnp.logical_and(s == 0, t == 0))
    def _():
        mu_prev[...] = mu0_ref[...]

    @pl.when(jnp.logical_and(s < STAGE_NUM, t == 0))
    def _():
        mu_acc[...] = jnp.zeros_like(mu_acc)

    # ---- EM stages (s in [0, STAGE_NUM))
    @pl.when(s < STAGE_NUM)
    def _():
        x1_t = x1_scr[t]                                    # (C, TN) bf16
        mu_bf = mu_prev[...].astype(jnp.bfloat16)           # (K, C)  bf16

        # E-step: scores (K, TN) — lanes = TN (K never on output lanes).
        sc = jnp.dot(mu_bf, x1_t, preferred_element_type=jnp.float32)
        sc = sc - jnp.max(sc, axis=0, keepdims=True)        # softmax over K (sublanes)
        e = jnp.exp(sc)
        z = e * pl.reciprocal(jnp.sum(e, axis=0, keepdims=True), approx=True)
        z_bf = z.astype(jnp.bfloat16)
        z_scr[t] = z_bf                                     # kept for the output pass

        # M-step partial over this N-tile: (K, C) — lanes = C, contract = TN.
        # NOTE: the reference's z_ spatial normalization is a positive per-k
        # scale that cancels under the l2 norm below and is skipped
        # (eps-level difference only).
        mu_acc[...] += jax.lax.dot_general(
            z_bf, x1_t, (((1,), (1,)), ((), ())),
            preferred_element_type=jnp.float32)

        # Finalize the stage on the last N-tile: l2 norm over C, hand over.
        @pl.when(t == n_tiles - 1)
        def _():
            m = mu_acc[...]
            mu_prev[...] = m * jax.lax.rsqrt(
                jnp.sum(m * m, axis=1, keepdims=True) + 1e-12)

    # ---- output pass (s == STAGE_NUM): recon + relu + conv2(+BN) + residual
    @pl.when(s == STAGE_NUM)
    def _():
        mu_kc = mu_prev[...]                                # (K, C) final mu
        mu_ck = mu_kc.T.astype(jnp.bfloat16)                # tiny (C, K) transpose
        x_rec = jnp.dot(mu_ck, z_scr[t],
                        preferred_element_type=jnp.float32)  # (C, TN)
        x_rec = jnp.maximum(x_rec, 0.0)
        y = jnp.dot(w2_ref[...], x_rec.astype(jnp.bfloat16),
                    preferred_element_type=jnp.float32) + b2_ref[...]
        out_ref[0] = jnp.maximum(y + x_ref[0].astype(jnp.float32), 0.0)

        @pl.when(t == n_tiles - 1)
        def _():
            mu_out_ref[0] = mu_kc


def _pick_tile_n(n, tile_n):
    """Largest N-tile <= tile_n that is a multiple of 128 and divides n."""
    if n <= tile_n or n % 128 != 0:
        return n
    tn = max(128, (min(tile_n, n) // 128) * 128)
    while n % tn != 0:
        tn -= 128
    return tn


def _vmem_capacity_bytes(default=64 * 2**20):
    try:
        return int(getattr(pltpu.get_tpu_info(), "vmem_capacity_bytes", default))
    except Exception:
        return default


@functools.partial(jax.jit, static_argnames=("tile_n",))
def emau_forward(x_nchw, w1, b1, w2, bn_gamma, bn_beta, bn_mean, bn_var, mu0,
                 *, tile_n=2048):
    """x_nchw: (B, C, H, W) f32. Returns (out_nchw, mu) matching EMAU.forward."""
    B, C, H, W = x_nchw.shape
    N = H * W
    K = mu0.shape[-1]
    eps = 1e-5

    TN = _pick_tile_n(N, tile_n)
    NT = N // TN

    # channels-first (C, N) layout == plain NCHW reshape; bf16 halves HBM/VMEM.
    x_flat = x_nchw.reshape(B, C, N).astype(jnp.bfloat16)

    w1_bf = w1.astype(jnp.bfloat16)                           # (C_out, C_in)
    b1_col = b1.reshape(C, 1).astype(jnp.float32)

    # conv2 + eval-mode BatchNorm folded into one weight + bias
    bn_scale = bn_gamma / jnp.sqrt(bn_var + eps)
    bn_shift = bn_beta - bn_mean * bn_scale
    w2_bf = (w2 * bn_scale[:, None]).astype(jnp.bfloat16)
    b2_col = bn_shift.reshape(C, 1).astype(jnp.float32)

    mu0_kc = jnp.transpose(mu0.reshape(C, K)).astype(jnp.float32)   # (K, C)

    # VMEM budget: estimate usage and cap by the chip's actual capacity.
    blk_x_bytes = C * TN * 2
    blk_out_bytes = C * TN * 4
    est = (2 * blk_x_bytes + 2 * blk_out_bytes        # double-buffered x / out blocks
           + 2 * 2 * C * C * 2                        # conv1/conv2 weights (bf16)
           + (C + K) * N * 2                          # x1 / z VMEM scratches (bf16)
           + 4 * K * C * 4 + 2 * C * 4                # mu scratch/acc/out + mu0 + biases
           + 8 * C * TN * 4)                          # headroom for f32 intermediates
    vmem_limit = int(min(_vmem_capacity_bytes() - 2 * 2**20,
                         max(32 * 2**20, 2 * est)))

    def x_map(b, s, t):
        # x is only needed for conv1 (s == 0) and the residual (s == STAGE_NUM);
        # park on tile 0 otherwise so the block is not re-fetched every step.
        need = jnp.logical_or(s == 0, s == STAGE_NUM)
        return (b, 0, jnp.where(need, t, 0))

    def out_map(b, s, t):
        # only the output pass writes; constant index before that avoids stale
        # HBM write-backs of the output block.
        return (b, 0, jnp.where(s == STAGE_NUM, t, 0))

    const = lambda b, s, t: (0, 0)

    out_flat, mu_kc_out = pl.pallas_call(
        emau_kernel,
        out_shape=(
            jax.ShapeDtypeStruct((B, C, N), jnp.float32),
            jax.ShapeDtypeStruct((B, K, C), jnp.float32),
        ),
        grid_spec=pltpu.PrefetchScalarGridSpec(
            num_scalar_prefetch=0,
            grid=(B, STAGE_NUM + 1, NT),
            in_specs=[
                pl.BlockSpec((1, C, TN), x_map),      # x (bf16, channels-first)
                pl.BlockSpec((C, C), const),          # conv1 weight (bf16)
                pl.BlockSpec((C, 1), const),          # conv1 bias
                pl.BlockSpec((C, C), const),          # conv2 weight * bn_scale (bf16)
                pl.BlockSpec((C, 1), const),          # folded BN shift
                pl.BlockSpec((K, C), const),          # mu init (K, C)
            ],
            out_specs=[
                pl.BlockSpec((1, C, TN), out_map),
                pl.BlockSpec((1, K, C), lambda b, s, t: (b, 0, 0)),
            ],
            scratch_shapes=[
                pltpu.VMEM((NT, C, TN), jnp.bfloat16),   # x1 = conv1(x)
                pltpu.VMEM((NT, K, TN), jnp.bfloat16),   # z of the current stage
                pltpu.VMEM((K, C), jnp.float32),         # mu carried across stages
                pltpu.VMEM((K, C), jnp.float32),         # M-step accumulator
            ]),
        compiler_params=pltpu.CompilerParams(
            dimension_semantics=("parallel", "arbitrary", "arbitrary"),
            vmem_limit_bytes=vmem_limit),
    )(x_flat, w1_bf, b1_col, w2_bf, b2_col, mu0_kc)

    out_nchw = out_flat.reshape(B, C, H, W)
    mu_out = jnp.transpose(mu_kc_out, (0, 2, 1))              # (B, C, K)
    return out_nchw, mu_out


def emau_reference(x_nchw, w1, b1, w2, bn_gamma, bn_beta, bn_mean, bn_var, mu0,
                   stage_num=STAGE_NUM):
    """Pure-JAX f32 re-implementation of EMAU.forward (eval-mode BN)."""
    B, C, H, W = x_nchw.shape
    K = mu0.shape[-1]
    eps = 1e-5
    idn = x_nchw
    x = jnp.einsum('bchw,dc->bdhw', x_nchw, w1) + b1[None, :, None, None]
    xf = x.reshape(B, C, H * W)                               # (B, C, N)
    mu = jnp.broadcast_to(mu0.reshape(1, C, K), (B, C, K))
    z = None
    for _ in range(stage_num):
        z = jnp.einsum('bcn,bck->bnk', xf, mu)
        z = jax.nn.softmax(z, axis=2)
        z_ = z / (1e-6 + jnp.sum(z, axis=1, keepdims=True))
        mu = jnp.einsum('bcn,bnk->bck', xf, z_)
        mu = mu / (1e-6 + jnp.sqrt(jnp.sum(mu * mu, axis=1, keepdims=True)))
    xr = jnp.einsum('bck,bnk->bcn', mu, z).reshape(B, C, H, W)
    xr = jnp.maximum(xr, 0.0)
    y = jnp.einsum('bchw,dc->bdhw', xr, w2)
    scale = bn_gamma / jnp.sqrt(bn_var + eps)
    shift = bn_beta - bn_mean * scale
    y = y * scale[None, :, None, None] + shift[None, :, None, None]
    out = jnp.maximum(y + idn, 0.0)
    return out, mu


def init_params(key, c, k):
    """Deterministic parameter init mirroring EMAU.__init__ shapes/distributions."""
    k_mu, k_w1, k_b1, k_w2 = jax.random.split(key, 4)
    mu = jax.random.normal(k_mu, (1, c, k), jnp.float32) * math.sqrt(2.0 / k)
    mu = mu / (1e-6 + jnp.sqrt(jnp.sum(mu * mu, axis=1, keepdims=True)))
    w1 = jax.random.normal(k_w1, (c, c), jnp.float32) * math.sqrt(2.0 / c)
    b1 = jnp.zeros((c,), jnp.float32)
    w2 = jax.random.normal(k_w2, (c, c), jnp.float32) * math.sqrt(2.0 / c)
    bn_gamma = jnp.ones((c,), jnp.float32)
    bn_beta = jnp.zeros((c,), jnp.float32)
    bn_mean = jnp.zeros((c,), jnp.float32)
    bn_var = jnp.ones((c,), jnp.float32)
    return dict(w1=w1, b1=b1, w2=w2, bn_gamma=bn_gamma, bn_beta=bn_beta,
                bn_mean=bn_mean, bn_var=bn_var, mu0=mu)


if __name__ == "__main__":
    B, C, H, W, K = 2, 64, 16, 16, 32
    key = jax.random.PRNGKey(0)
    k_x, k_p = jax.random.split(key)
    x = jax.random.normal(k_x, (B, C, H, W), jnp.float32)
    params = init_params(k_p, C, K)
    args = (x, params["w1"], params["b1"], params["w2"],
            params["bn_gamma"], params["bn_beta"], params["bn_mean"],
            params["bn_var"], params["mu0"])

    out1, mu1 = emau_forward(*args)                  # single N tile (NT = 1)
    out2, mu2 = emau_forward(*args, tile_n=128)      # exercise the N-tiled path (NT = 2)
    jax.block_until_ready((out1, mu1, out2, mu2))

    assert out1.shape == (B, C, H, W) and mu1.shape == (B, C, K)

    # both tilings must agree (small f32-accumulation-order differences allowed)
    assert float(jnp.max(jnp.abs(out1 - out2))) < 5e-2
    assert float(jnp.max(jnp.abs(mu1 - mu2))) < 2e-2

    # validate against the pure-JAX f32 reference (bf16 MXU feeds, bf16 input,
    # dropped z_ normalization => loose tolerance)
    out_r, mu_r = emau_reference(*args)
    for o, m in ((out1, mu1), (out2, mu2)):
        max_out_err = float(jnp.max(jnp.abs(o - out_r)))
        max_mu_err = float(jnp.max(jnp.abs(m - mu_r)))
        assert max_out_err < 1.5e-1, f"out mismatch: {max_out_err}"
        assert max_mu_err < 5e-2, f"mu mismatch: {max_mu_err}"

    print("KERNEL_OK")
</pallas_src>

<mosaic_0001>
module attributes {stable_mosaic.version = 11 : i64} {
  func.func @emau_kernel(%arg0: i32, %arg1: i32, %arg2: i32, %arg3: memref<1x64x256xbf16, #tpu.memory_space<vmem>>, %arg4: memref<64x64xbf16, #tpu.memory_space<vmem>>, %arg5: memref<64x1xf32, #tpu.memory_space<vmem>>, %arg6: memref<64x64xbf16, #tpu.memory_space<vmem>>, %arg7: memref<64x1xf32, #tpu.memory_space<vmem>>, %arg8: memref<32x64xf32, #tpu.memory_space<vmem>>, %arg9: memref<1x64x256xf32, #tpu.memory_space<vmem>>, %arg10: memref<1x32x64xf32, #tpu.memory_space<vmem>>, %arg11: memref<1x64x256xbf16, #tpu.memory_space<vmem>>, %arg12: memref<1x32x256xbf16, #tpu.memory_space<vmem>>, %arg13: memref<32x64xf32, #tpu.memory_space<vmem>>, %arg14: memref<32x64xf32, #tpu.memory_space<vmem>>) attributes {dimension_semantics = [#tpu.dimension_semantics<parallel>, #tpu.dimension_semantics<arbitrary>, #tpu.dimension_semantics<arbitrary>], iteration_bounds = array<i64: 2, 4, 1>, scalar_prefetch = 0 : i64, scratch_operands = 4 : i64, tpu.core_type = #tpu.core_type<tc>, window_params = [{transform_indices = @transform_0, window_bounds = array<i64: 1, 64, 256>}, {pipeline_mode = #tpu.pipeline_mode<synchronous>, transform_indices = @transform_1, window_bounds = array<i64: 64, 64>}, {pipeline_mode = #tpu.pipeline_mode<synchronous>, transform_indices = @transform_2, window_bounds = array<i64: 64, 1>}, {pipeline_mode = #tpu.pipeline_mode<synchronous>, transform_indices = @transform_3, window_bounds = array<i64: 64, 64>}, {pipeline_mode = #tpu.pipeline_mode<synchronous>, transform_indices = @transform_4, window_bounds = array<i64: 64, 1>}, {pipeline_mode = #tpu.pipeline_mode<synchronous>, transform_indices = @transform_5, window_bounds = array<i64: 32, 64>}, {transform_indices = @transform_6, window_bounds = array<i64: 1, 64, 256>}, {transform_indices = @transform_7, window_bounds = array<i64: 1, 32, 64>}]} {
    %c0_i32 = arith.constant 0 : i32
    %0 = arith.cmpi eq, %arg1, %c0_i32 : i32
    %1 = arith.extui %0 : i1 to i32
    %c0_i32_0 = arith.constant 0 : i32
    %2 = arith.cmpi ne, %1, %c0_i32_0 : i32
    scf.if %2 {
      %c0 = arith.constant 0 : index
      %c0_10 = arith.constant 0 : index
      %19 = vector.load %arg4[%c0, %c0_10] : memref<64x64xbf16, #tpu.memory_space<vmem>>, vector<64x64xbf16>
      %c0_11 = arith.constant 0 : index
      %c0_12 = arith.constant 0 : index
      %c0_13 = arith.constant 0 : index
      %20 = vector.load %arg3[%c0_11, %c0_12, %c0_13] : memref<1x64x256xbf16, #tpu.memory_space<vmem>>, vector<1x64x256xbf16>
      %21 = vector.shape_cast %20 : vector<1x64x256xbf16> to vector<64x256xbf16>
      %cst = arith.constant dense<0.000000e+00> : vector<64x256xf32>
      %22 = tpu.matmul %19, %21, %cst {dimension_numbers = #tpu.dot_dimension_numbers<[1], [0], [0], [1], [0, 0, 1, 1], [], []>} : vector<64x64xbf16>, vector<64x256xbf16>, vector<64x256xf32> -> vector<64x256xf32>
      %c0_14 = arith.constant 0 : index
      %c0_15 = arith.constant 0 : index
      %23 = vector.load %arg5[%c0_14, %c0_15] : memref<64x1xf32, #tpu.memory_space<vmem>>, vector<64x1xf32>
      %24 = vector.broadcast %23 : vector<64x1xf32> to vector<64x256xf32>
      %25 = arith.addf %22, %24 : vector<64x256xf32>
      %26 = arith.truncf %25 : vector<64x256xf32> to vector<64x256xbf16>
      %27 = arith.index_cast %arg2 : i32 to index
      %c0_16 = arith.constant 0 : index
      %c0_17 = arith.constant 0 : index
      %28 = vector.load %arg11[%27, %c0_16, %c0_17] : memref<1x64x256xbf16, #tpu.memory_space<vmem>>, vector<1x64x256xbf16>
      %29 = vector.shape_cast %28 : vector<1x64x256xbf16> to vector<64x256xbf16>
      %30 = vector.shape_cast %26 : vector<64x256xbf16> to vector<1x64x256xbf16>
      tpu.vector_store %arg11[%27, %c0_16, %c0_17], %30 {strides = array<i32>} : memref<1x64x256xbf16, #tpu.memory_space<vmem>>, vector<1x64x256xbf16>,
    } else {
    }
    %c0_i32_1 = arith.constant 0 : i32
    %3 = arith.cmpi eq, %arg1, %c0_i32_1 : i32
    %c0_i32_2 = arith.constant 0 : i32
    %4 = arith.cmpi eq, %arg2, %c0_i32_2 : i32
    %5 = arith.andi %3, %4 : i1
    %6 = arith.extui %5 : i1 to i32
    %c0_i32_3 = arith.constant 0 : i32
    %7 = arith.cmpi ne, %6, %c0_i32_3 : i32
    scf.if %7 {
      %c0 = arith.constant 0 : index
      %c0_10 = arith.constant 0 : index
      %19 = vector.load %arg8[%c0, %c0_10] : memref<32x64xf32, #tpu.memory_space<vmem>>, vector<32x64xf32>
      %c0_11 = arith.constant 0 : index
      %c0_12 = arith.constant 0 : index
      %20 = vector.load %arg13[%c0_11, %c0_12] : memref<32x64xf32, #tpu.memory_space<vmem>>, vector<32x64xf32>
      tpu.vector_store %arg13[%c0_11, %c0_12], %19 {strides = array<i32>} : memref<32x64xf32, #tpu.memory_space<vmem>>, vector<32x64xf32>,
    } else {
    }
    %c3_i32 = arith.constant 3 : i32
    %8 = arith.cmpi slt, %arg1, %c3_i32 : i32
    %c0_i32_4 = arith.constant 0 : i32
    %9 = arith.cmpi eq, %arg2, %c0_i32_4 : i32
    %10 = arith.andi %8, %9 : i1
    %11 = arith.extui %10 : i1 to i32
    %c0_i32_5 = arith.constant 0 : i32
    %12 = arith.cmpi ne, %11, %c0_i32_5 : i32
    scf.if %12 {
      %cst = arith.constant 0.000000e+00 : f32
      %19 = vector.broadcast %cst : f32 to vector<32x64xf32>
      %c0 = arith.constant 0 : index
      %c0_10 = arith.constant 0 : index
      %20 = vector.load %arg14[%c0, %c0_10] : memref<32x64xf32, #tpu.memory_space<vmem>>, vector<32x64xf32>
      tpu.vector_store %arg14[%c0, %c0_10], %19 {strides = array<i32>} : memref<32x64xf32, #tpu.memory_space<vmem>>, vector<32x64xf32>,
    } else {
    }
    %c3_i32_6 = arith.constant 3 : i32
    %13 = arith.cmpi slt, %arg1, %c3_i32_6 : i32
    %14 = arith.extui %13 : i1 to i32
    %c0_i32_7 = arith.constant 0 : i32
    %15 = arith.cmpi ne, %14, %c0_i32_7 : i32
    scf.if %15 {
      %19 = arith.index_cast %arg2 : i32 to index
      %c0 = arith.constant 0 : index
      %c0_10 = arith.constant 0 : index
      %20 = vector.load %arg11[%19, %c0, %c0_10] : memref<1x64x256xbf16, #tpu.memory_space<vmem>>, vector<1x64x256xbf16>
      %21 = vector.shape_cast %20 : vector<1x64x256xbf16> to vector<64x256xbf16>
      %c0_11 = arith.constant 0 : index
      %c0_12 = arith.constant 0 : index
      %22 = vector.load %arg13[%c0_11, %c0_12] : memref<32x64xf32, #tpu.memory_space<vmem>>, vector<32x64xf32>
      %23 = arith.truncf %22 : vector<32x64xf32> to vector<32x64xbf16>
      %cst = arith.constant dense<0.000000e+00> : vector<32x256xf32>
      %24 = tpu.matmul %23, %21, %cst {dimension_numbers = #tpu.dot_dimension_numbers<[1], [0], [0], [1], [0, 0, 1, 1], [], []>} : vector<32x64xbf16>, vector<64x256xbf16>, vector<32x256xf32> -> vector<32x256xf32>
      %cst_13 = arith.constant dense<0xFF800000> : vector<256xf32>
      %25 = vector.multi_reduction <maximumf>, %24, %cst_13 [0] : vector<32x256xf32> to vector<256xf32>
      %26 = vector.shape_cast %25 : vector<256xf32> to vector<1x256xf32>
      %27 = vector.broadcast %26 : vector<1x256xf32> to vector<32x256xf32>
      %28 = arith.subf %24, %27 : vector<32x256xf32>
      %29 = math.exp %28 : vector<32x256xf32>
      %cst_14 = arith.constant dense<0.000000e+00> : vector<256xf32>
      %30 = vector.multi_reduction <add>, %29, %cst_14 [0] : vector<32x256xf32> to vector<256xf32>
      %31 = vector.shape_cast %30 : vector<256xf32> to vector<1x256xf32>
      %32 = tpu.reciprocal %31 {approx = true} : vector<1x256xf32> -> vector<1x256xf32>
      %33 = vector.broadcast %32 : vector<1x256xf32> to vector<32x256xf32>
      %34 = arith.mulf %29, %33 : vector<32x256xf32>
      %35 = arith.truncf %34 : vector<32x256xf32> to vector<32x256xbf16>
      %36 = arith.index_cast %arg2 : i32 to index
      %c0_15 = arith.constant 0 : index
      %c0_16 = arith.constant 0 : index
      %37 = vector.load %arg12[%36, %c0_15, %c0_16] : memref<1x32x256xbf16, #tpu.memory_space<vmem>>, vector<1x32x256xbf16>
      %38 = vector.shape_cast %37 : vector<1x32x256xbf16> to vector<32x256xbf16>
      %39 = vector.shape_cast %35 : vector<32x256xbf16> to vector<1x32x256xbf16>
      tpu.vector_store %arg12[%36, %c0_15, %c0_16], %39 {strides = array<i32>} : memref<1x32x256xbf16, #tpu.memory_space<vmem>>, vector<1x32x256xbf16>,
      %c0_17 = arith.constant 0 : index
      %c0_18 = arith.constant 0 : index
      %40 = vector.load %arg14[%c0_17, %c0_18] : memref<32x64xf32, #tpu.memory_space<vmem>>, vector<32x64xf32>
      %cst_19 = arith.constant dense<0.000000e+00> : vector<32x64xf32>
      %41 = tpu.matmul %35, %21, %cst_19 {dimension_numbers = #tpu.dot_dimension_numbers<[1], [1], [0], [0], [0, 0, 1, 0], [], []>} : vector<32x256xbf16>, vector<64x256xbf16>, vector<32x64xf32> -> vector<32x64xf32>
      %42 = arith.addf %40, %41 : vector<32x64xf32>
      %c0_20 = arith.constant 0 : index
      %c0_21 = arith.constant 0 : index
      %43 = vector.load %arg14[%c0_20, %c0_21] : memref<32x64xf32, #tpu.memory_space<vmem>>, vector<32x64xf32>
      tpu.vector_store %arg14[%c0_20, %c0_21], %42 {strides = array<i32>} : memref<32x64xf32, #tpu.memory_space<vmem>>, vector<32x64xf32>,
      %c0_i32_22 = arith.constant 0 : i32
      %44 = arith.cmpi eq, %arg2, %c0_i32_22 : i32
      %45 = arith.extui %44 : i1 to i32
      %c0_i32_23 = arith.constant 0 : i32
      %46 = arith.cmpi ne, %45, %c0_i32_23 : i32
      scf.if %46 {
        %c0_24 = arith.constant 0 : index
        %c0_25 = arith.constant 0 : index
        %47 = vector.load %arg14[%c0_24, %c0_25] : memref<32x64xf32, #tpu.memory_space<vmem>>, vector<32x64xf32>
        %48 = arith.mulf %47, %47 : vector<32x64xf32>
        %cst_26 = arith.constant dense<0.000000e+00> : vector<32xf32>
        %49 = vector.multi_reduction <add>, %48, %cst_26 [1] : vector<32x64xf32> to vector<32xf32>
        %50 = vector.shape_cast %49 : vector<32xf32> to vector<32x1xf32>
        %cst_27 = arith.constant 9.99999996E-13 : f32
        %51 = vector.broadcast %cst_27 : f32 to vector<32x1xf32>
        %52 = arith.addf %50, %51 : vector<32x1xf32>
        %53 = math.rsqrt %52 : vector<32x1xf32>
        %54 = vector.broadcast %53 : vector<32x1xf32> to vector<32x64xf32>
        %55 = arith.mulf %47, %54 : vector<32x64xf32>
        %c0_28 = arith.constant 0 : index
        %c0_29 = arith.constant 0 : index
        %56 = vector.load %arg13[%c0_28, %c0_29] : memref<32x64xf32, #tpu.memory_space<vmem>>, vector<32x64xf32>
        tpu.vector_store %arg13[%c0_28, %c0_29], %55 {strides = array<i32>} : memref<32x64xf32, #tpu.memory_space<vmem>>, vector<32x64xf32>,
      } else {
      }
    } else {
    }
    %c3_i32_8 = arith.constant 3 : i32
    %16 = arith.cmpi eq, %arg1, %c3_i32_8 : i32
    %17 = arith.extui %16 : i1 to i32
    %c0_i32_9 = arith.constant 0 : i32
    %18 = arith.cmpi ne, %17, %c0_i32_9 : i32
    scf.if %18 {
      %c0 = arith.constant 0 : index
      %c0_10 = arith.constant 0 : index
      %19 = vector.load %arg13[%c0, %c0_10] : memref<32x64xf32, #tpu.memory_space<vmem>>, vector<32x64xf32>
      %20 = tpu.transpose %19, [1, 0] : vector<32x64xf32> -> vector<64x32xf32>
      %21 = arith.truncf %20 : vector<64x32xf32> to vector<64x32xbf16>
      %22 = arith.index_cast %arg2 : i32 to index
      %c0_11 = arith.constant 0 : index
      %c0_12 = arith.constant 0 : index
      %23 = vector.load %arg12[%22, %c0_11, %c0_12] : memref<1x32x256xbf16, #tpu.memory_space<vmem>>, vector<1x32x256xbf16>
      %24 = vector.shape_cast %23 : vector<1x32x256xbf16> to vector<32x256xbf16>
      %cst = arith.constant dense<0.000000e+00> : vector<64x256xf32>
      %25 = tpu.matmul %21, %24, %cst {dimension_numbers = #tpu.dot_dimension_numbers<[1], [0], [0], [1], [0, 0, 1, 1], [], []>} : vector<64x32xbf16>, vector<32x256xbf16>, vector<64x256xf32> -> vector<64x256xf32>
      %cst_13 = arith.constant 0.000000e+00 : f32
      %26 = vector.broadcast %cst_13 : f32 to vector<64x256xf32>
      %27 = arith.maximumf %25, %26 : vector<64x256xf32>
      %c0_14 = arith.constant 0 : index
      %c0_15 = arith.constant 0 : index
      %28 = vector.load %arg6[%c0_14, %c0_15] : memref<64x64xbf16, #tpu.memory_space<vmem>>, vector<64x64xbf16>
      %29 = arith.truncf %27 : vector<64x256xf32> to vector<64x256xbf16>
      %cst_16 = arith.constant dense<0.000000e+00> : vector<64x256xf32>
      %30 = tpu.matmul %28, %29, %cst_16 {dimension_numbers = #tpu.dot_dimension_numbers<[1], [0], [0], [1], [0, 0, 1, 1], [], []>} : vector<64x64xbf16>, vector<64x256xbf16>, vector<64x256xf32> -> vector<64x256xf32>
      %c0_17 = arith.constant 0 : index
      %c0_18 = arith.constant 0 : index
      %31 = vector.load %arg7[%c0_17, %c0_18] : memref<64x1xf32, #tpu.memory_space<vmem>>, vector<64x1xf32>
      %32 = vector.broadcast %31 : vector<64x1xf32> to vector<64x256xf32>
      %33 = arith.addf %30, %32 : vector<64x256xf32>
      %c0_19 = arith.constant 0 : index
      %c0_20 = arith.constant 0 : index
      %c0_21 = arith.constant 0 : index
      %34 = vector.load %arg3[%c0_19, %c0_20, %c0_21] : memref<1x64x256xbf16, #tpu.memory_space<vmem>>, vector<1x64x256xbf16>
      %35 = vector.shape_cast %34 : vector<1x64x256xbf16> to vector<64x256xbf16>
      %36 = arith.extf %35 : vector<64x256xbf16> to vector<64x256xf32>
      %37 = arith.addf %33, %36 : vector<64x256xf32>
      %cst_22 = arith.constant 0.000000e+00 : f32
      %38 = vector.broadcast %cst_22 : f32 to vector<64x256xf32>
      %39 = arith.maximumf %37, %38 : vector<64x256xf32>
      %c0_23 = arith.constant 0 : index
      %c0_24 = arith.constant 0 : index
      %c0_25 = arith.constant 0 : index
      %40 = vector.load %arg9[%c0_23, %c0_24, %c0_25] : memref<1x64x256xf32, #tpu.memory_space<vmem>>, vector<1x64x256xf32>
      %41 = vector.shape_cast %40 : vector<1x64x256xf32> to vector<64x256xf32>
      %42 = vector.shape_cast %39 : vector<64x256xf32> to vector<1x64x256xf32>
      tpu.vector_store %arg9[%c0_23, %c0_24, %c0_25], %42 {strides = array<i32>} : memref<1x64x256xf32, #tpu.memory_space<vmem>>, vector<1x64x256xf32>,
      %c0_i32_26 = arith.constant 0 : i32
      %43 = arith.cmpi eq, %arg2, %c0_i32_26 : i32
      %44 = arith.extui %43 : i1 to i32
      %c0_i32_27 = arith.constant 0 : i32
      %45 = arith.cmpi ne, %44, %c0_i32_27 : i32
      scf.if %45 {
        %c0_28 = arith.constant 0 : index
        %c0_29 = arith.constant 0 : index
        %c0_30 = arith.constant 0 : index
        %46 = vector.load %arg10[%c0_28, %c0_29, %c0_30] : memref<1x32x64xf32, #tpu.memory_space<vmem>>, vector<1x32x64xf32>
        %47 = vector.shape_cast %46 : vector<1x32x64xf32> to vector<32x64xf32>
        %48 = vector.shape_cast %19 : vector<32x64xf32> to vector<1x32x64xf32>
        tpu.vector_store %arg10[%c0_28, %c0_29, %c0_30], %48 {strides = array<i32>} : memref<1x32x64xf32, #tpu.memory_space<vmem>>, vector<1x32x64xf32>,
      } else {
      }
    } else {
    }
    return
  }
  func.func @transform_0(%arg0: i32, %arg1: i32, %arg2: i32) -> (i32, i32, i32) {
    %c0_i32 = arith.constant 0 : i32
    %0 = arith.cmpi eq, %arg1, %c0_i32 : i32
    %c3_i32 = arith.constant 3 : i32
    %1 = arith.cmpi eq, %arg1, %c3_i32 : i32
    %2 = arith.ori %0, %1 : i1
    %c0_i32_0 = arith.constant 0 : i32
    %3 = arith.select %2, %arg2, %c0_i32_0 : i32
    %c0_i32_1 = arith.constant 0 : i32
    %c0_i32_2 = arith.constant 0 : i32
    return %arg0, %c0_i32_1, %3 : i32, i32, i32
  }
  func.func @transform_1(%arg0: i32, %arg1: i32, %arg2: i32) -> (i32, i32) {
    %c0_i32 = arith.constant 0 : i32
    %c0_i32_0 = arith.constant 0 : i32
    %c0_i32_1 = arith.constant 0 : i32
    return %c0_i32, %c0_i32_0 : i32, i32
  }
  func.func @transform_2(%arg0: i32, %arg1: i32, %arg2: i32) -> (i32, i32) {
    %c0_i32 = arith.constant 0 : i32
    %c0_i32_0 = arith.constant 0 : i32
    %c0_i32_1 = arith.constant 0 : i32
    return %c0_i32, %c0_i32_0 : i32, i32
  }
  func.func @transform_3(%arg0: i32, %arg1: i32, %arg2: i32) -> (i32, i32) {
    %c0_i32 = arith.constant 0 : i32
    %c0_i32_0 = arith.constant 0 : i32
    %c0_i32_1 = arith.constant 0 : i32
    return %c0_i32, %c0_i32_0 : i32, i32
  }
  func.func @transform_4(%arg0: i32, %arg1: i32, %arg2: i32) -> (i32, i32) {
    %c0_i32 = arith.constant 0 : i32
    %c0_i32_0 = arith.constant 0 : i32
    %c0_i32_1 = arith.constant 0 : i32
    return %c0_i32, %c0_i32_0 : i32, i32
  }
  func.func @transform_5(%arg0: i32, %arg1: i32, %arg2: i32) -> (i32, i32) {
    %c0_i32 = arith.constant 0 : i32
    %c0_i32_0 = arith.constant 0 : i32
    %c0_i32_1 = arith.constant 0 : i32
    return %c0_i32, %c0_i32_0 : i32, i32
  }
  func.func @transform_6(%arg0: i32, %arg1: i32, %arg2: i32) -> (i32, i32, i32) {
    %c3_i32 = arith.constant 3 : i32
    %0 = arith.cmpi eq, %arg1, %c3_i32 : i32
    %c0_i32 = arith.constant 0 : i32
    %1 = arith.select %0, %arg2, %c0_i32 : i32
    %c0_i32_0 = arith.constant 0 : i32
    %c0_i32_1 = arith.constant 0 : i32
    return %arg0, %c0_i32_0, %1 : i32, i32, i32
  }
  func.func @transform_7(%arg0: i32, %arg1: i32, %arg2: i32) -> (i32, i32, i32) {
    %c0_i32 = arith.constant 0 : i32
    %c0_i32_0 = arith.constant 0 : i32
    %c0_i32_1 = arith.constant 0 : i32
    return %arg0, %c0_i32, %c0_i32_0 : i32, i32, i32
  }
}

</mosaic_0001>

<bundles_post_ra>
// kernel: emau_forward.1
= control target key start
LH: loop header
LB: loop body
LE: loop exit
PB: predicated region body
PF: predicated region fallthrough
CT: control target
= control target key end

     0   :  { %13 = vsyncpa [#allocation7], 0  ;;  %s2107_s0 = inlined_call_operand.vmem [shape: bf16[2,64,256], index: 0, kind: input, shape index: {}]   ;;  %s2108_s1 = inlined_call_operand.vmem [shape: bf16[64,64], index: 1, kind: input, shape index: {}]   ;;  %s2109_s2 = inlined_call_operand.vmem [shape: f32[64,1], index: 2, kind: input, shape index: {}]   ;;  %s2110_s3 = inlined_call_operand.vmem [shape: bf16[64,64], index: 3, kind: input, shape index: {}]   ;;  %s2111_s4 = inlined_call_operand.vmem [shape: f32[64,1], index: 4, kind: input, shape index: {}]   ;;  %s2112_s5 = inlined_call_operand.vmem [shape: f32[32,64], index: 5, kind: input, shape index: {}]   ;;  %s2113_s6 = inlined_call_operand.vmem [shape: f32[2,64,256], index: 6, kind: output, shape index: {0}]   ;;  %s2114_s7 = inlined_call_operand.hbm [shape: f32[2,32,64], index: 7, kind: output, shape index: {1}]  }
   0x1   :  { %15 = vsyncpa [#allocation7 + $0x1], 0  ;;  %s1791_s24 = smov 0   ;;  %s1793_s25 = smov 0  }
   0x2   :  { %s1795_s26 = smov 0   ;;  %s1797_s27 = smov 0  }
   0x3   :  { %s1799_s28 = smov 0   ;;  %s1801_s29 = smov 0  }
   0x4   :  { %s1803_s30 = smov 0   ;;  %s1805_s8 = smov 0  }
   0x5 LB: > { %s1455_s9 = sadd.s32 4294967295, %s1742_s8   ;;  %s1456_s10 = sadd.s32 4294967294, %s1742_s8   ;;  %s1742_s8 = sphi %s1805_s8, %s21_s8   ;;  %s1738_s30 = sphi %s1803_s30, %s2130_s30   ;;  %s1734_s29 = sphi %s1801_s29, %s2129_s29   ;;  %s1730_s28 = sphi %s1799_s28, %s2128_s28   ;;  %s1726_s27 = sphi %s1797_s27, %s2127_s27   ;;  %s1722_s26 = sphi %s1795_s26, %s2126_s26   ;;  %s1718_s25 = sphi %s1793_s25, %s2125_s25   ;;  %s1714_s24 = sphi %s1791_s24, %s2124_s24  }
   0x6   : > { %s36_s11 = sadd.s32 1, %s1734_s29  ;;  %s40_s12 = sadd.s32 1, %s1738_s30 }
   0x7   : > { %p38_p0 = scmp.ge.s32.totalorder %s36_s11, 4  ;;  %p230_p1 = scmp.ne.s32.totalorder %s1722_s26, %s1718_s25 }
   0x8   : > { %p231_p2 = scmp.eq.s32.totalorder %s1455_s9, 7  ;;  %p236_p4 = scmp.ne.s32.totalorder %s1718_s25, %s1714_s24 }
   0x9   : > { %s2132_s11 = smov (%p38_p0, %s36_s11), 0  ;;  %s2134_s12 = smov (!%p38_p0, %s40_s12), %s1738_s30 }
   0xa   : > { %2117 = sst [smem:[#allocation9_spill]] %s2132_s11  ;;  %p1840_p3 = por %p231_p2, %p230_p1 }
   0xb   : > { %p42_p5 = scmp.ge.s32.totalorder %s2134_s12, 2  ;;  %p237_p6 = scmp.eq.s32.totalorder %s1456_s10, 7 }
   0xc   : > { %p1459_p7 = scmp.ge.s32.totalorder %s1742_s8, 1  ;;  %p291_p8 = scmp.lt.s32.totalorder %s1742_s8, 9 }
   0xd   : > { %s2136_s12 = smov (%p42_p5, %s2134_s12), 0  ;;  %p1850_p9 = por %p237_p6, %p236_p4 }
   0xe   : > { %2119 = sst [smem:[#allocation10_spill]] %s2136_s12  ;;  %p292_p10 = pnand %p1459_p7, %p291_p8 }
   0xf   : > { %s217_s15 = ssub.s32 %s1738_s30, %s2136_s12  ;;  %s220_s16 = sadd.s32 1, %s1722_s26 }
  0x10   : > { %p218_p11 = scmp.eq.s32.totalorder %s217_s15, 0  ;;  %295 = sbr.rel (%p292_p10) target bundleno = 1649 (0x671), region = 44 }
  0x11   : > { %s2116_s18 = sand.u32 (!%p292_p10), 1, %s1718_s25   ;;  %p347_p12 = scmp.lt.s32.totalorder (!%p292_p10), %s1730_s28, 1 }
  0x12   : > { %s1858_s17 = scalar_select %p218_p11, %s1722_s26, %s220_s16  }
  0x13   : > { %s1460_s19 = sshll.u32 (!%p292_p10), %s2116_s18, 5  ;;  %p375_p13 = scmp.eq.s32.totalorder (!%p292_p10), %s1726_s27, 0 }
  0x14   : > { %s1876_s11 = scalar_lea.vmem (!%p292_p10), [#allocation6], %s1460_s19  ;;  %p1465_p0 = scmp.ne.s32.totalorder (!%p292_p10), %s1726_s27, 0 }
  0x17   : > { %s348_s20 = scalar_select %p347_p12, %s1730_s28, 1 }
  0x18   : > { %378 = sbr.rel (%p1465_p0) target bundleno = 272 (0x110), region = 48  ;;  %v1744_v2 = vmov (!%p1465_p0), 0   ;;  %v397_v8 = vld [vmem:[%s2109_s2 + $0x10] sm:$0xff] (!%p1465_p0)  ;;  %v395_v9 = vld [vmem:[%s2109_s2] sm:$0xff] (!%p1465_p0)  ;;  %v398_v11 = vld [vmem:[%s2109_s2 + $0x18] sm:$0xff] (!%p1465_p0)  ;;  %vm503_vm0 = vcmask (!%p1465_p0), 523264  }
  0x19   : > { %s1505_s21 = sshll.u32 %s348_s20, 6  ;;  %s1506_s22 = sshll.u32 %s348_s20, 7  ;;  %548 = vmatprep.mubr.bf16.mxu0 (!%p1465_p0), %v1744_v2  ;;  %568 = vmatprep.mubr.bf16.mxu1 (!%p1465_p0), %v1744_v2  ;;  %v396_v12 = vld [vmem:[%s2109_s2 + $0x8] sm:$0xff] (!%p1465_p0)  ;;  %v1610_v13 = vld [vmem:[%s2108_s1] sm:$0xff] (!%p1465_p0)   ;;  %v1611_v14 = vld [vmem:[%s2108_s1 + $0x10] sm:$0xff] (!%p1465_p0)  }
  0x1a   : > { %s1869_s10 = scalar_lea.vmem %s2107_s0, %s1505_s21  ;;  %s1874_s12 = scalar_lea.vmem %s2113_s6, %s1506_s22  ;;  %1597 = vset.pattern.permute.xlu1 (!%p1465_p0), %v1744_v2  ;;  %1596 = vset.pattern.permute.xlu0 (!%p1465_p0), %v1744_v2  ;;  %v400_v15 = vld [vmem:[%s2109_s2 + $0x28] sm:$0xff] (!%p1465_p0)  ;;  %v399_v16 = vld [vmem:[%s2109_s2 + $0x20] sm:$0xff] (!%p1465_p0)  ;;  %v402_v17 = vld [vmem:[%s2109_s2 + $0x38] sm:$0xff] (!%p1465_p0) }
  0x1b   : > { %v1598_v0 = vld [vmem:[%s1869_s10 + $0x4] ss:$8 sps:$4 sm:$0xff] (!%p1465_p0)   ;;  %v1600_v1 = vld [vmem:[%s1869_s10] ss:$8 sps:$4 sm:$0xff] (!%p1465_p0)   ;;  %v1601_v3 = vld [vmem:[%s1869_s10 + $0x14] ss:$8 sps:$4 sm:$0xff] (!%p1465_p0)   ;;  %415 = vperm.xlu1 (!%p1465_p0), %1597, %v397_v8   ;;  %405 = vperm.xlu0 (!%p1465_p0), %1596, %v395_v9  }
  0x1c   : > { %516 = vmatprep.subr.bf16.mxu0 (!%p1465_p0), %v1598_v0  ;;  %1510 = vmatprep.subr.bf16.mxu1 (!%p1465_p0), %v1598_v0  ;;  %v1603_v4 = vld [vmem:[%s1869_s10 + $0x10] ss:$8 sps:$4 sm:$0xff] (!%p1465_p0)   ;;  %v1604_v5 = vld [vmem:[%s1869_s10 + $0x24] ss:$8 sps:$4 sm:$0xff] (!%p1465_p0)   ;;  %v1606_v6 = vld [vmem:[%s1869_s10 + $0x20] ss:$8 sps:$4 sm:$0xff] (!%p1465_p0)  }
  0x1d   : > { %517 = vmatpush1.bf16.msra.mxu0 (!%p1465_p0), %v1600_v1  ;;  %1514 = vmatpush1.bf16.msra.mxu1 (!%p1465_p0), %v1600_v1  ;;  %v1607_v7 = vld [vmem:[%s1869_s10 + $0x34] ss:$8 sps:$4 sm:$0xff] (!%p1465_p0)   ;;  %v1609_v10 = vld [vmem:[%s1869_s10 + $0x30] ss:$8 sps:$4 sm:$0xff] (!%p1465_p0)   ;;  %v1612_v19 = vld [vmem:[%s2108_s1 + $0x8] sm:$0xff] (!%p1465_p0)  }
  0x1e   : > { %518 = vmatprep.subr.bf16.mxu0 (!%p1465_p0), %v1601_v3  ;;  %1511 = vmatprep.subr.bf16.mxu1 (!%p1465_p0), %v1601_v3  ;;  %v401_v18 = vld [vmem:[%s2109_s2 + $0x30] sm:$0xff] (!%p1465_p0)  ;;  %v1613_v20 = vld [vmem:[%s2108_s1 + $0x18] sm:$0xff] (!%p1465_p0)  }
  0x1f   : > { %420 = vperm.xlu1 %1597, %v398_v11   ;;  %410 = vperm.xlu0 %1596, %v396_v12  }
  0x21   : > { %519 = vmatpush1.bf16.msra.mxu0 %v1603_v4  ;;  %1515 = vmatpush1.bf16.msra.mxu1 %v1603_v4 }
  0x22   : > { %520 = vmatprep.subr.bf16.mxu0 %v1604_v5  ;;  %1512 = vmatprep.subr.bf16.mxu1 %v1604_v5 }
  0x23   : > { %430 = vperm.xlu1 %1597, %v400_v15   ;;  %425 = vperm.xlu0 %1596, %v399_v16  }
  0x25   : > { %521 = vmatpush1.bf16.msra.mxu0 %v1606_v6  ;;  %1516 = vmatpush1.bf16.msra.mxu1 %v1606_v6 }
  0x26   : > { %522 = vmatprep.subr.bf16.mxu0 %v1607_v7  ;;  %1513 = vmatprep.subr.bf16.mxu1 %v1607_v7 }
  0x27   : > { %440 = vperm.xlu1 %1597, %v402_v17   ;;  %435 = vperm.xlu0 %1596, %v401_v18  }
  0x29   : > { %523 = vmatpush1.bf16.msra.mxu0 %v1609_v10  ;;  %1517 = vmatpush1.bf16.msra.mxu1 %v1609_v10 }
  0x2c   : > { %1478 = vmatmul.mubr.msk.bf16.vlgmr.msra.gmra.mrb[0].mxu0 %vm503_vm0, %v1610_v13  ;;  %1480 = vmatmul.mubr.msk.bf16.vlgmr.msra.gmra.mrb[0].mxu1 %vm503_vm0, %v1611_v14 }
  0x2d   : > { %558 = vmatprep.mubr.bf16.mxu0 %v1744_v2  ;;  %578 = vmatprep.mubr.bf16.mxu1 %v1744_v2 }
  0x34   : > { %1479 = vmatmul.mubr.msk.bf16.gmra.mrb[4].mxu0 %vm503_vm0, %v1612_v19  ;;  %1481 = vmatmul.mubr.msk.bf16.gmra.mrb[4].mxu1 %vm503_vm0, %v1613_v20 }
  0x9a   : > { %v416_v21 = vpop.permute.xlu1 %415  ;;  %v406_v22 = vpop.permute.xlu0 %405 }
  0x9e   : > { %v421_v23 = vpop.permute.xlu1 %420  ;;  %v411_v24 = vpop.permute.xlu0 %410 }
  0xa2   : > { %v431_v25 = vpop.permute.xlu1 %430  ;;  %v426_v26 = vpop.permute.xlu0 %425 }
  0xa6   : > { %v441_v47 = vpop.permute.xlu1 %440  ;;  %v436_v48 = vpop.permute.xlu0 %435 }
  0xff   : > { %v550_v27 = vpop.f32.mrb[0].mxu0  ;;  %v570_v28 = vpop.f32.mrb[0].mxu1 }
 0x100   : > { %v552_v29 = vpop.f32.mrb[1].mxu0  ;;  %v572_v30 = vpop.f32.mrb[1].mxu1  ;;  %v551_v33 = vadd.f32 %v550_v27, %v406_v22  ;;  %v571_v34 = vadd.f32 %v570_v28, %v426_v26 }
 0x101   : > { %v554_v31 = vpop.f32.mrb[2].mxu0  ;;  %v574_v32 = vpop.f32.mrb[2].mxu1  ;;  %v553_v39 = vadd.f32 %v552_v29, %v406_v22  ;;  %v573_v40 = vadd.f32 %v572_v30, %v426_v26 }
 0x102   : > { %v555_v35 = vadd.f32 %v554_v31, %v411_v24  ;;  %v575_v36 = vadd.f32 %v574_v32, %v431_v25  ;;  %v556_v37 = vpop.f32.mrb[3].mxu0  ;;  %v576_v38 = vpop.f32.mrb[3].mxu1 }
 0x103   : > { %v557_v41 = vadd.f32 %v556_v37, %v411_v24  ;;  %v577_v42 = vadd.f32 %v576_v38, %v431_v25 }
 0x104   : > { %v589_v43 = vpack.c.bf16 %v555_v35, %v551_v33  ;;  %v593_v44 = vpack.c.bf16 %v575_v36, %v571_v34 }
 0x105   : > { %v590_v45 = vpack.c.bf16 %v557_v41, %v553_v39  ;;  %v594_v46 = vpack.c.bf16 %v577_v42, %v573_v40 }
 0x106   : > { %600 = vst [vmem:[#allocation2] sm:$0xff] %v589_v43  ;;  %604 = vst [vmem:[#allocation2 + $0x20] sm:$0xff] %v593_v44 }
 0x107   : > { %601 = vst [vmem:[#allocation2 + $0x8] sm:$0xff] %v590_v45  ;;  %605 = vst [vmem:[#allocation2 + $0x28] sm:$0xff] %v594_v46  ;;  %v560_v49 = vpop.f32.mrb[4].mxu0  ;;  %v580_v50 = vpop.f32.mrb[4].mxu1 }
 0x108   : > { %v562_v51 = vpop.f32.mrb[5].mxu0  ;;  %v582_v52 = vpop.f32.mrb[5].mxu1  ;;  %v561_v55 = vadd.f32 %v560_v49, %v416_v21  ;;  %v581_v56 = vadd.f32 %v580_v50, %v436_v48 }
 0x109   : > { %v564_v53 = vpop.f32.mrb[6].mxu0  ;;  %v584_v54 = vpop.f32.mrb[6].mxu1  ;;  %v563_v61 = vadd.f32 %v562_v51, %v416_v21  ;;  %v583_v62 = vadd.f32 %v582_v52, %v436_v48 }
 0x10a   : > { %v565_v57 = vadd.f32 %v564_v53, %v421_v23  ;;  %v585_v58 = vadd.f32 %v584_v54, %v441_v47  ;;  %v566_v59 = vpop.f32.mrb[7].mxu0  ;;  %v586_v60 = vpop.f32.mrb[7].mxu1 }
 0x10b   : > { %v567_v63 = vadd.f32 %v566_v59, %v421_v23  ;;  %v587_v0 = vadd.f32 %v586_v60, %v441_v47 }
 0x10c   : > { %v591_v1 = vpack.c.bf16 %v565_v57, %v561_v55  ;;  %v595_v2 = vpack.c.bf16 %v585_v58, %v581_v56 }
 0x10d   : > { %v592_v3 = vpack.c.bf16 %v567_v63, %v563_v61  ;;  %v596_v4 = vpack.c.bf16 %v587_v0, %v583_v62 }
 0x10e   : > { %602 = vst [vmem:[#allocation2 + $0x10] sm:$0xff] %v591_v1  ;;  %606 = vst [vmem:[#allocation2 + $0x30] sm:$0xff] %v595_v2 }
 0x10f   : > { %603 = vst [vmem:[#allocation2 + $0x18] sm:$0xff] %v592_v3  ;;  %607 = vst [vmem:[#allocation2 + $0x38] sm:$0xff] %v596_v4 }
 0x110 PF: > { %612 = sbr.rel (!%p375_p13) target bundleno = 279 (0x117), region = 52  ;;  %v613_v5 = vld [vmem:[%s2112_s5] sm:$0xff] (%p375_p13)  ;;  %vm617_vm1 = vcmask (%p375_p13), 523264   ;;  %v614_v6 = vld [vmem:[%s2112_s5 + $0x8] sm:$0xff] (%p375_p13)  ;;  %v615_v7 = vld [vmem:[%s2112_s5 + $0x10] sm:$0xff] (%p375_p13) }
 0x111   : > { %618 = vst.msk [vmem:[#allocation4] sm:$0xff] (%p375_p13), %vm617_vm1, %v613_v5  ;;  %619 = vst.msk [vmem:[#allocation4 + $0x8] sm:$0xff] (%p375_p13), %vm617_vm1, %v614_v6  ;;  %v616_v8 = vld [vmem:[%s2112_s5 + $0x18] sm:$0xff] (%p375_p13) }
 0x112   : > { %620 = vst.msk [vmem:[#allocation4 + $0x10] sm:$0xff] (%p375_p13), %vm617_vm1, %v615_v7  ;;  %621 = vst.msk [vmem:[#allocation4 + $0x18] sm:$0xff] (%p375_p13), %vm617_vm1, %v616_v8 }
 0x117 PF: > { %p622_p1 = scmp.lt.s32.totalorder %s1726_s27, 3 }
 0x118   : > { %vm627_vm2 = vcmask (%p622_p1), 523264   ;;  %v1745_v9 = vmov (%p622_p1), 0.0  }
 0x119   : > { %626 = sbr.rel (!%p622_p1) target bundleno = 288 (0x120), region = 56  ;;  %628 = vst.msk [vmem:[#allocation5] sm:$0xff] (%p622_p1), %vm627_vm2, %v1745_v9  ;;  %629 = vst.msk [vmem:[#allocation5 + $0x8] sm:$0xff] (%p622_p1), %vm627_vm2, %v1745_v9 }
 0x11a   : > { %630 = vst.msk [vmem:[#allocation5 + $0x10] sm:$0xff] (%p622_p1), %vm627_vm2, %v1745_v9  ;;  %631 = vst.msk [vmem:[#allocation5 + $0x18] sm:$0xff] (%p622_p1), %vm627_vm2, %v1745_v9 }
 0x120 PF: > { %p1484_p2 = scmp.ge.s32.totalorder %s1726_s27, 3 }
 0x121   : > { %v639_v10 = vld [vmem:[#allocation2 + $0x8] sm:$0xff] (!%p1484_p2)  ;;  %v638_v11 = vld [vmem:[#allocation2] sm:$0xff] (!%p1484_p2)  ;;  %v641_v12 = vld [vmem:[#allocation2 + $0x18] sm:$0xff] (!%p1484_p2)  ;;  %v1746_v13 = vmov (!%p1484_p2), 0   ;;  %vm652_vm3 = vcmask (!%p1484_p2), 523264  }
 0x122   : > { %634 = sbr.rel (%p1484_p2) target bundleno = 993 (0x3e1), region = 60  ;;  %659 = vmatprep.subr.bf16.mxu0 (!%p1484_p2), %v639_v10  ;;  %691 = vmatprep.mubr.bf16.mxu0 (!%p1484_p2), %v1746_v13  ;;  %v640_v14 = vld [vmem:[#allocation2 + $0x10] sm:$0xff] (!%p1484_p2)  ;;  %v643_v15 = vld [vmem:[#allocation2 + $0x28] sm:$0xff] (!%p1484_p2)  ;;  %v642_v16 = vld [vmem:[#allocation2 + $0x20] sm:$0xff] (!%p1484_p2) }
 0x123   : > { %660 = vmatpush1.bf16.msra.mxu0 (!%p1484_p2), %v638_v11  ;;  %797 = vmatprep.subr.bf16.mxu1 (!%p1484_p2), %v639_v10  ;;  %v645_v17 = vld [vmem:[#allocation2 + $0x38] sm:$0xff] (!%p1484_p2)  ;;  %v646_v18 = vld [vmem:[#allocation4] sm:$0xff] (!%p1484_p2)  ;;  %v647_v19 = vld [vmem:[#allocation4 + $0x8] sm:$0xff] (!%p1484_p2) }
 0x124   : > { %661 = vmatprep.subr.bf16.mxu0 (!%p1484_p2), %v641_v12  ;;  %798 = vmatpush1.bf16.xpose.msra.mxu1 (!%p1484_p2), %v638_v11  ;;  %v644_v20 = vld [vmem:[#allocation2 + $0x30] sm:$0xff] (!%p1484_p2)  ;;  %v650_v21 = vpack.c.bf16 (!%p1484_p2), %v647_v19, %v646_v18  ;;  %v649_v23 = vld [vmem:[#allocation4 + $0x18] sm:$0xff] (!%p1484_p2) }
 0x125   : > { %799 = vmatprep.subr.bf16.mxu1 (!%p1484_p2), %v641_v12  ;;  %v648_v22 = vld [vmem:[#allocation4 + $0x10] sm:$0xff] (!%p1484_p2) }
 0x126   : > { %v651_v24 = vpack.c.bf16 (!%p1484_p2), %v649_v23, %v648_v22 }
 0x127   : > { %662 = vmatpush1.bf16.msra.mxu0 (!%p1484_p2), %v640_v14 }
 0x128   : > { %663 = vmatprep.subr.bf16.mxu0 (!%p1484_p2), %v643_v15 }
 0x12b   : > { %664 = vmatpush1.bf16.msra.mxu0 %v642_v16 }
 0x12c   : > { %665 = vmatprep.subr.bf16.mxu0 %v645_v17  ;;  %800 = vmatpush1.bf16.xpose.msra.mxu1 %v640_v14 }
 0x12d   : > { %801 = vmatprep.subr.bf16.mxu1 %v643_v15 }
 0x12f   : > { %666 = vmatpush1.bf16.msra.mxu0 %v644_v20 }
 0x132   : > { %1485 = vmatmul.mubr.msk.bf16.vlgmr.msra.gmra.mrb[0].mxu0 %vm652_vm3, %v650_v21 }
 0x133   : > { %701 = vmatprep.mubr.bf16.mxu0 %v1746_v13 }
 0x134   : > { %802 = vmatpush1.bf16.xpose.msra.mxu1 %v642_v16 }
 0x135   : > { %803 = vmatprep.subr.bf16.mxu1 %v645_v17 }
 0x13a   : > { %1486 = vmatmul.mubr.msk.bf16.gmra.mrb[4].mxu0 %vm652_vm3, %v651_v24 }
 0x13c   : > { %804 = vmatpush1.bf16.xpose.msra.mxu1 %v644_v20 }
 0x205   : > { %v693_v25 = vpop.f32.mrb[0].mxu0 }
 0x206   : > { %v695_v26 = vpop.f32.mrb[1].mxu0 }
 0x207   : > { %v697_v27 = vpop.f32.mrb[2].mxu0 }
 0x208   : > { %v699_v28 = vpop.f32.mrb[3].mxu0 }
 0x20d   : > { %v703_v29 = vpop.f32.mrb[4].mxu0 }
 0x20e   : > { %v712_v30 = vmax.f32 %v693_v25, %v703_v29  ;;  %v705_v31 = vpop.f32.mrb[5].mxu0 }
 0x20f   : > { %v721_v32 = vmax.f32 %v695_v26, %v705_v31  ;;  %v707_v33 = vpop.f32.mrb[6].mxu0 }
 0x210   : > { %v713_v34 = vmax.f32 %v697_v27, %v707_v33  ;;  %v709_v35 = vpop.f32.mrb[7].mxu0 }
 0x211   : > { %v722_v36 = vmax.f32 %v699_v28, %v709_v35 }
 0x212   : > { %v714_v37 = vmax.f32 %v712_v30, %v713_v34 }
 0x213   : > { %v723_v38 = vmax.f32 %v721_v32, %v722_v36 }
 0x214   : > { %v715_v39 = vrot.slane %v714_v37, 4 }
 0x215   : > { %v724_v40 = vrot.slane %v723_v38, 4 }
 0x216   : > { %v716_v41 = vmax.f32 %v714_v37, %v715_v39 }
 0x217   : > { %v725_v42 = vmax.f32 %v723_v38, %v724_v40 }
 0x218   : > { %v717_v43 = vrot.slane %v716_v41, 2 }
 0x219   : > { %v726_v44 = vrot.slane %v725_v42, 2 }
 0x21a   : > { %v718_v45 = vmax.f32 %v716_v41, %v717_v43  ;;  %v793_v43 = vld [vmem:[#allocation5] sm:$0xff] }
 0x21b   : > { %v727_v46 = vmax.f32 %v725_v42, %v726_v44 }
 0x21c   : > { %v719_v47 = vrot.slane %v718_v45, 1 }
 0x21d   : > { %v728_v48 = vrot.slane %v727_v46, 1 }
 0x21e   : > { %v720_v49 = vmax.f32 %v718_v45, %v719_v47  ;;  %v794_v45 = vld [vmem:[#allocation5 + $0x8] sm:$0xff] }
 0x21f   : > { %v729_v50 = vmax.f32 %v727_v46, %v728_v48 }
 0x220   : > { %v730_v51 = vsub.f32 %v693_v25, %v720_v49  ;;  %v732_v52 = vsub.f32 %v697_v27, %v720_v49  ;;  %v734_v53 = vsub.f32 %v703_v29, %v720_v49  ;;  %v736_v54 = vsub.f32 %v707_v33, %v720_v49 }
 0x221   : > { %v731_v55 = vsub.f32 %v695_v26, %v729_v50  ;;  %v733_v56 = vsub.f32 %v699_v28, %v729_v50  ;;  %v735_v57 = vsub.f32 %v705_v31, %v729_v50  ;;  %v737_v58 = vsub.f32 %v709_v35, %v729_v50 }
 0x222   : > { %v738_v59 = vmul.f32 1.442695, %v730_v51  ;;  %v742_v60 = vmul.f32 1.442695, %v732_v52  ;;  %v746_v61 = vmul.f32 1.442695, %v734_v53 }
 0x223   : > { %v750_v62 = vmul.f32 1.442695, %v736_v54  ;;  %v740_v63 = vmul.f32 1.442695, %v731_v55  ;;  %v744_v0 = vmul.f32 1.442695, %v733_v56 }
 0x224   : > { %1614 = vpow2.f32 %v738_v59  ;;  %v748_v1 = vmul.f32 1.442695, %v735_v57  ;;  %v752_v2 = vmul.f32 1.442695, %v737_v58  ;;  %v795_v51 = vld [vmem:[#allocation5 + $0x10] sm:$0xff]  ;;  %v796_v53 = vld [vmem:[#allocation5 + $0x18] sm:$0xff] }
 0x225   : > { %1616 = vpow2.f32 %v742_v60 }
 0x226   : > { %1618 = vpow2.f32 %v746_v61 }
 0x227   : > { %1620 = vpow2.f32 %v750_v62 }
 0x228   : > { %1622 = vpow2.f32 %v740_v63 }
 0x229   : > { %1624 = vpow2.f32 %v744_v0 }
 0x22a   : > { %1626 = vpow2.f32 %v748_v1 }
 0x22b   : > { %1628 = vpow2.f32 %v752_v2 }
 0x22e   : > { %v1615_v3 = vpop.eup %1614 }
 0x22f   : > { %v1617_v4 = vpop.eup %1616 }
 0x230   : > { %v1619_v5 = vpop.eup %1618  ;;  %v754_v6 = vadd.f32 %v1617_v4, %v1615_v3 }
 0x231   : > { %v1621_v7 = vpop.eup %1620 }
 0x232   : > { %v1623_v8 = vpop.eup %1622  ;;  %v755_v9 = vadd.f32 %v1619_v5, %v754_v6 }
 0x233   : > { %v1625_v10 = vpop.eup %1624 }
 0x234   : > { %v756_v11 = vadd.f32 %v1621_v7, %v755_v9  ;;  %v763_v12 = vadd.f32 %v1625_v10, %v1623_v8  ;;  %v1627_v13 = vpop.eup %1626 }
 0x235   : > { %v1629_v16 = vpop.eup %1628 }
 0x236   : > { %v757_v14 = vrot.slane %v756_v11, 4  ;;  %v764_v15 = vadd.f32 %v1627_v13, %v763_v12 }
 0x238   : > { %v758_v17 = vadd.f32 %v757_v14, %v756_v11  ;;  %v765_v18 = vadd.f32 %v1629_v16, %v764_v15 }
 0x23a   : > { %v759_v19 = vrot.slane %v758_v17, 2  ;;  %v766_v20 = vrot.slane %v765_v18, 4 }
 0x23c   : > { %v760_v21 = vadd.f32 %v759_v19, %v758_v17  ;;  %v767_v22 = vadd.f32 %v766_v20, %v765_v18 }
 0x23e   : > { %v761_v23 = vrot.slane %v760_v21, 1  ;;  %v768_v24 = vrot.slane %v767_v22, 2 }
 0x240   : > { %v762_v25 = vadd.f32 %v761_v23, %v760_v21  ;;  %v769_v26 = vadd.f32 %v768_v24, %v767_v22 }
 0x242   : > { %1630 = vrcp.f32 %v762_v25  ;;  %v770_v27 = vrot.slane %v769_v26, 1 }
 0x244   : > { %v771_v28 = vadd.f32 %v770_v27, %v769_v26 }
 0x246   : > { %1632 = vrcp.f32 %v771_v28 }
 0x24c   : > { %v1631_v29 = vpop.eup %1630 }
 0x24d   : > { %v774_v30 = vmul.f32 %v1631_v29, %v1615_v3  ;;  %v776_v31 = vmul.f32 %v1631_v29, %v1617_v4  ;;  %v778_v32 = vmul.f32 %v1631_v29, %v1619_v5  ;;  %v780_v33 = vmul.f32 %v1631_v29, %v1621_v7 }
 0x24f   : > { %v782_v34 = vpack.c.bf16 %v776_v31, %v774_v30  ;;  %v784_v35 = vpack.c.bf16 %v780_v33, %v778_v32 }
 0x250   : > { %v1633_v36 = vpop.eup %1632 }
 0x251   : > { %v775_v37 = vmul.f32 %v1633_v36, %v1623_v8  ;;  %v777_v38 = vmul.f32 %v1633_v36, %v1625_v10  ;;  %789 = vst [vmem:[#allocation3] sm:$0xff] %v782_v34  ;;  %v779_v39 = vmul.f32 %v1633_v36, %v1627_v13  ;;  %v781_v40 = vmul.f32 %v1633_v36, %v1629_v16 }
 0x252   : > { %791 = vst [vmem:[#allocation3 + $0x10] sm:$0xff] %v784_v35 }
 0x253   : > { %v783_v41 = vpack.c.bf16 %v777_v38, %v775_v37  ;;  %v785_v42 = vpack.c.bf16 %v781_v40, %v779_v39 }
 0x255   : > { %790 = vst [vmem:[#allocation3 + $0x8] sm:$0xff] %v783_v41  ;;  %829 = vmatprep.mubr.bf16.mxu1 %v783_v41  ;;  %792 = vst [vmem:[#allocation3 + $0x18] sm:$0xff] %v785_v42 }
 0x256   : > { %830 = vmatmul.mubr.bf16.vlgmr.msra.gmra.mrb[0].mxu1 %v782_v34 }
 0x257   : > { %837 = vmatprep.mubr.bf16.mxu1 %v785_v42 }
 0x25e   : > { %838 = vmatmul.mubr.bf16.gmra.mrb[4].mxu1 %v784_v35 }
 0x329   : > { %v831_v44 = vpop.f32.mrb[0].mxu1 }
 0x32a   : > { %v846_v46 = vadd.f32 %v831_v44, %v793_v43  ;;  %v833_v47 = vpop.f32.mrb[1].mxu1 }
 0x32b   : > { %v834_v48 = vpop.f32.mrb[2].mxu1 }
 0x32c   : > { %850 = vst.msk [vmem:[#allocation5] sm:$0xff] %vm652_vm3, %v846_v46  ;;  %v847_v49 = vadd.f32 %v834_v48, %v794_v45  ;;  %v836_v50 = vpop.f32.mrb[3].mxu1 }
 0x32e   : > { %851 = vst.msk [vmem:[#allocation5 + $0x8] sm:$0xff] %vm652_vm3, %v847_v49 }
 0x331   : > { %v839_v52 = vpop.f32.mrb[4].mxu1 }
 0x332   : > { %v848_v54 = vadd.f32 %v839_v52, %v795_v51  ;;  %v841_v55 = vpop.f32.mrb[5].mxu1 }
 0x333   : > { %v842_v56 = vpop.f32.mrb[6].mxu1  ;;  %v857_v57 = vld [vmem:[#allocation5] sm:$0xff] }
 0x334   : > { %852 = vst.msk [vmem:[#allocation5 + $0x10] sm:$0xff] %vm652_vm3, %v848_v54  ;;  %v849_v58 = vadd.f32 %v842_v56, %v796_v53  ;;  %v844_v59 = vpop.f32.mrb[7].mxu1  ;;  %v861_v60 = vmul.f32 %v857_v57, %v857_v57 }
 0x335   : > { %v858_v61 = vld [vmem:[#allocation5 + $0x8] sm:$0xff] }
 0x336   : > { %853 = vst.msk [vmem:[#allocation5 + $0x18] sm:$0xff] %vm652_vm3, %v849_v58  ;;  %v865_v62 = vsel %vm652_vm3, %v861_v60, 0.0  ;;  %v862_v63 = vmul.f32 %v858_v61, %v858_v61 }
 0x337   : > { %866 = vadd.xlane.f32.xlu0 %v865_v62 }
 0x338   : > { %v868_v0 = vsel %vm652_vm3, %v862_v63, 0.0 }
 0x33b   : > { %869 = vadd.xlane.f32.xlu0 %v868_v0  ;;  %v859_v1 = vld [vmem:[#allocation5 + $0x10] sm:$0xff] }
 0x33c   : > { %v863_v2 = vmul.f32 %v859_v1, %v859_v1 }
 0x33d   : > { %v860_v3 = vld [vmem:[#allocation5 + $0x18] sm:$0xff] }
 0x33e   : > { %v871_v4 = vsel %vm652_vm3, %v863_v2, 0.0  ;;  %v864_v5 = vmul.f32 %v860_v3, %v860_v3 }
 0x33f   : > { %872 = vadd.xlane.f32.xlu1 %v871_v4 }
 0x340   : > { %v874_v6 = vsel %vm652_vm3, %v864_v5, 0.0 }
 0x343   : > { %875 = vadd.xlane.f32.xlu1 %v874_v6 }
 0x3c4   : > { %v867_v7 = vpop.xlane.xlu0 %866 }
 0x3c5   : > { %v877_v8 = vadd.f32 1e-12, %v867_v7 }
 0x3c7   : > { %1634 = vrsqrt.f32 %v877_v8 }
 0x3c8   : > { %v870_v9 = vpop.xlane.xlu0 %869 }
 0x3c9   : > { %v878_v10 = vadd.f32 1e-12, %v870_v9 }
 0x3cb   : > { %1636 = vrsqrt.f32 %v878_v10 }
 0x3cc   : > { %v873_v11 = vpop.xlane.xlu1 %872 }
 0x3cd   : > { %v879_v12 = vadd.f32 1e-12, %v873_v11 }
 0x3cf   : > { %1638 = vrsqrt.f32 %v879_v12 }
 0x3d0   : > { %v876_v13 = vpop.xlane.xlu1 %875 }
 0x3d1   : > { %v1635_v14 = vpop.eup %1634  ;;  %v880_v15 = vadd.f32 1e-12, %v876_v13 }
 0x3d2   : > { %v885_v16 = vmul.f32 %v1635_v14, %v857_v57 }
 0x3d3   : > { %1640 = vrsqrt.f32 %v880_v15 }
 0x3d4   : > { %889 = vst.msk [vmem:[#allocation4] sm:$0xff] %vm652_vm3, %v885_v16 }
 0x3d5   : > { %v1637_v17 = vpop.eup %1636 }
 0x3d6   : > { %v886_v18 = vmul.f32 %v1637_v17, %v858_v61 }
 0x3d8   : > { %890 = vst.msk [vmem:[#allocation4 + $0x8] sm:$0xff] %vm652_vm3, %v886_v18 }
 0x3d9   : > { %v1639_v19 = vpop.eup %1638 }
 0x3da   : > { %v887_v20 = vmul.f32 %v1639_v19, %v859_v1 }
 0x3dc   : > { %891 = vst.msk [vmem:[#allocation4 + $0x10] sm:$0xff] %vm652_vm3, %v887_v20 }
 0x3dd   : > { %v1641_v21 = vpop.eup %1640 }
 0x3de   : > { %v888_v22 = vmul.f32 %v1641_v21, %v860_v3 }
 0x3e0   : > { %892 = vst.msk [vmem:[#allocation4 + $0x18] sm:$0xff] %vm652_vm3, %v888_v22 }
 0x3e1 PF: > { %p1487_p4 = scmp.ne.s32.totalorder %s1726_s27, 3 }
 0x3e2   : > { %v897_v23 = vld [vmem:[#allocation4] sm:$0xff] (!%p1487_p4)  ;;  %vm1130_vm4 = vcmask (!%p1487_p4), 523264   ;;  %v898_v24 = vld [vmem:[#allocation4 + $0x8] sm:$0xff] (!%p1487_p4)  ;;  %v943_v29 = vld [vmem:[#allocation3 + $0x18] sm:$0xff] (!%p1487_p4)  ;;  %v1747_v31 = vmov (!%p1487_p4), 0   ;;  %vm944_vm5 = vcmask (!%p1487_p4), 261120  }
 0x3e3   : > { %896 = sbr.rel (%p1487_p4) target bundleno = 1623 (0x657), region = 68  ;;  %v899_v25 = vld [vmem:[#allocation4 + $0x10] sm:$0xff] (!%p1487_p4)  ;;  %901 = vxpose.xlu0.b32.start [1/4] (short) (narrow) (!%p1487_p4), %v897_v23, 64  ;;  %1291 = vst.msk [vmem:[%s1876_s11] sm:$0xff] (!%p1487_p4), %vm1130_vm4, %v897_v23  ;;  %1292 = vst.msk [vmem:[%s1876_s11 + $0x8] sm:$0xff] (!%p1487_p4), %vm1130_vm4, %v898_v24  ;;  %v941_v27 = vld [vmem:[#allocation3 + $0x8] sm:$0xff] (!%p1487_p4)  ;;  %989 = vmatprep.mubr.bf16.mxu0 (!%p1487_p4), %v1747_v31 }
 0x3e4   : > { %1293 = vst.msk [vmem:[%s1876_s11 + $0x10] sm:$0xff] (!%p1487_p4), %vm1130_vm4, %v899_v25  ;;  %v940_v28 = vld [vmem:[#allocation3] sm:$0xff] (!%p1487_p4)  ;;  %957 = vmatprep.subr.bf16.mxu0 (!%p1487_p4), %v941_v27  ;;  %v942_v30 = vld [vmem:[#allocation3 + $0x10] sm:$0xff] (!%p1487_p4)  ;;  %1175 = vmatprep.mubr.bf16.mxu1 (!%p1487_p4), %v1747_v31  ;;  %v1063_v45 = vld [vmem:[%s2111_s4 + $0x8] sm:$0xff] (!%p1487_p4) }
 0x3e5   : > { %958 = vmatpush1.bf16.msra.mxu0 (!%p1487_p4), %v940_v28  ;;  %1642 = vset.pattern.permute.xlu1 (!%p1487_p4), %v1747_v31  ;;  %v1062_v44 = vld [vmem:[%s2111_s4] sm:$0xff] (!%p1487_p4)  ;;  %v1064_v47 = vld [vmem:[%s2111_s4 + $0x10] sm:$0xff] (!%p1487_p4)  ;;  %v1065_v48 = vld [vmem:[%s2111_s4 + $0x18] sm:$0xff] (!%p1487_p4) }
 0x3e6   : > { %959 = vmatprep.subr.bf16.mxu0 (!%p1487_p4), %v943_v29  ;;  %1072 = vperm.xlu1 (!%p1487_p4), %1642, %v1062_v44   ;;  %v1066_v46 = vld [vmem:[%s2111_s4 + $0x20] sm:$0xff] (!%p1487_p4)  ;;  %v1067_v49 = vld [vmem:[%s2111_s4 + $0x28] sm:$0xff] (!%p1487_p4)  ;;  %v1068_v50 = vld [vmem:[%s2111_s4 + $0x30] sm:$0xff] (!%p1487_p4) }
 0x3e7   : > { %v900_v26 = vld [vmem:[#allocation4 + $0x18] sm:$0xff] (!%p1487_p4)  ;;  %902 = vxpose.xlu0.b32.cont [2/4] (short) (narrow) (!%p1487_p4), %v898_v24, 64  ;;  %v1644_v28 = vld [vmem:[%s2110_s3] sm:$0xff] (!%p1487_p4)   ;;  %v1645_v29 = vld [vmem:[%s2110_s3 + $0x8] sm:$0xff] (!%p1487_p4)  }
 0x3e8   : > { %1294 = vst.msk [vmem:[%s1876_s11 + $0x18] sm:$0xff] (!%p1487_p4), %vm1130_vm4, %v900_v26  ;;  %v1069_v51 = vld [vmem:[%s2111_s4 + $0x38] sm:$0xff] (!%p1487_p4) }
 0x3e9   : > { %960 = vmatpush1.bf16.msra.mxu0 (!%p1487_p4), %v942_v30  ;;  %v1646_v30 = vld [vmem:[%s2110_s3 + $0x10] sm:$0xff] (!%p1487_p4)  }
 0x3ea   : > { %1077 = vperm.xlu1 %1642, %v1063_v45  }
 0x3eb   : > { %903 = vxpose.xlu0.b32.cont [3/4] (short) (narrow) %v899_v25, 64 }
 0x3ee   : > { %1082 = vperm.xlu1 %1642, %v1064_v47  }
 0x3ef   : > { %904 = vxpose.xlu0.b32.end [4/4] (short) (narrow) %v900_v26, 64 }
 0x3f2   : > { %1087 = vperm.xlu1 %1642, %v1065_v48  }
 0x3f6   : > { %1097 = vperm.xlu1 %1642, %v1067_v49  }
 0x3fa   : > { %1102 = vperm.xlu1 %1642, %v1068_v50  }
 0x3fe   : > { %1107 = vperm.xlu1 %1642, %v1069_v51   ;;  %v1218_v51 = vld [vmem:[%s1869_s10 + $0x10] sm:$0xff] }
 0x418   : > { %1643 = vset.pattern.permute.xlu0 %v1747_v31 }
 0x428   : > { %1092 = vperm.xlu0 %1643, %v1066_v46  }
 0x463   : > { %v917_v32 = vpop.trf.xlu0 }
 0x467   : > { %v918_v33 = vpop.trf.xlu0 }
 0x468   : > { %v933_v34 = vpack.c.bf16 %v918_v33, %v917_v32  ;;  %v1647_v32 = vld [vmem:[%s2110_s3 + $0x18] sm:$0xff]   ;;  %v1073_v33 = vpop.permute.xlu1 %1072 }
 0x46a   : > { %1488 = vmatmul.mubr.msk.bf16.vlgmr.msra.gmra.mrb[0].mxu0 %vm944_vm5, %v933_v34 }
 0x46b   : > { %v919_v35 = vpop.trf.xlu0  ;;  %999 = vmatprep.mubr.bf16.mxu0 %v1747_v31 }
 0x46c   : > { %v1078_v34 = vpop.permute.xlu1 %1077 }
 0x46f   : > { %v920_v36 = vpop.trf.xlu0 }
 0x470   : > { %v934_v37 = vpack.c.bf16 %v920_v36, %v919_v35  ;;  %v1216_v35 = vld [vmem:[%s1869_s10] sm:$0xff]  ;;  %v1217_v36 = vld [vmem:[%s1869_s10 + $0x8] sm:$0xff] }
 0x471   : > { %v1227_v45 = vunpack.c.h.bf16 %v1217_v36 }
 0x472   : > { %1489 = vmatmul.mubr.msk.bf16.gmra.mrb[4].mxu0 %vm944_vm5, %v934_v37  ;;  %v1224_v37 = vunpack.c.l.bf16 %v1216_v35 }
 0x473   : > { %v921_v38 = vpop.trf.xlu0  ;;  %1009 = vmatprep.mubr.bf16.mxu0 %v1747_v31 }
 0x477   : > { %v922_v39 = vpop.trf.xlu0 }
 0x478   : > { %v935_v40 = vpack.c.bf16 %v922_v39, %v921_v38  ;;  %v1225_v39 = vunpack.c.h.bf16 %v1216_v35 }
 0x47a   : > { %1490 = vmatmul.mubr.msk.bf16.gmra.mrb[8].mxu0 %vm944_vm5, %v935_v40 }
 0x47b   : > { %v923_v41 = vpop.trf.xlu0  ;;  %1019 = vmatprep.mubr.bf16.mxu0 %v1747_v31 }
 0x47f   : > { %v924_v42 = vpop.trf.xlu0 }
 0x480   : > { %v936_v43 = vpack.c.bf16 %v924_v42, %v923_v41  ;;  %v1226_v42 = vunpack.c.l.bf16 %v1217_v36  ;;  %v1222_v36 = vld [vmem:[%s1869_s10 + $0x30] sm:$0xff] }
 0x482   : > { %1491 = vmatmul.mubr.msk.bf16.gmra.mrb[12].mxu0 %vm944_vm5, %v936_v43 }
 0x53d   : > { %v991_v52 = vpop.f32.mrb[0].mxu0 }
 0x53e   : > { %v993_v53 = vpop.f32.mrb[1].mxu0  ;;  %v1030_v55 = vmax.f32 %v991_v52, 0.0 }
 0x53f   : > { %v995_v54 = vpop.f32.mrb[2].mxu0  ;;  %v1031_v58 = vmax.f32 %v993_v53, 0.0 }
 0x540   : > { %v1032_v56 = vmax.f32 %v995_v54, 0.0  ;;  %v997_v57 = vpop.f32.mrb[3].mxu0 }
 0x541   : > { %v1033_v59 = vmax.f32 %v997_v57, 0.0 }
 0x542   : > { %v1054_v60 = vpack.c.bf16 %v1032_v56, %v1030_v55  ;;  %v1219_v56 = vld [vmem:[%s1869_s10 + $0x18] sm:$0xff] }
 0x543   : > { %v1055_v61 = vpack.c.bf16 %v1033_v59, %v1031_v58  ;;  %v1228_v58 = vunpack.c.l.bf16 %v1218_v51 }
 0x545   : > { %v1001_v62 = vpop.f32.mrb[4].mxu0  ;;  %1143 = vmatprep.subr.bf16.mxu1 %v1055_v61 }
 0x546   : > { %v1003_v63 = vpop.f32.mrb[5].mxu0  ;;  %1144 = vmatpush1.bf16.msra.mxu1 %v1054_v60  ;;  %v1034_v1 = vmax.f32 %v1001_v62, 0.0  ;;  %v1229_v62 = vunpack.c.h.bf16 %v1218_v51 }
 0x547   : > { %v1005_v0 = vpop.f32.mrb[6].mxu0  ;;  %v1035_v4 = vmax.f32 %v1003_v63, 0.0 }
 0x548   : > { %v1036_v2 = vmax.f32 %v1005_v0, 0.0  ;;  %v1007_v3 = vpop.f32.mrb[7].mxu0 }
 0x549   : > { %v1037_v5 = vmax.f32 %v1007_v3, 0.0 }
 0x54a   : > { %v1056_v6 = vpack.c.bf16 %v1036_v2, %v1034_v1  ;;  %v1230_v1 = vunpack.c.l.bf16 %v1219_v56 }
 0x54b   : > { %v1057_v7 = vpack.c.bf16 %v1037_v5, %v1035_v4  ;;  %v1231_v4 = vunpack.c.h.bf16 %v1219_v56 }
 0x54d   : > { %v1011_v8 = vpop.f32.mrb[8].mxu0  ;;  %1145 = vmatprep.subr.bf16.mxu1 %v1057_v7 }
 0x54e   : > { %v1013_v9 = vpop.f32.mrb[9].mxu0  ;;  %1146 = vmatpush1.bf16.msra.mxu1 %v1056_v6  ;;  %v1038_v11 = vmax.f32 %v1011_v8, 0.0 }
 0x54f   : > { %v1015_v10 = vpop.f32.mrb[10].mxu0  ;;  %v1039_v14 = vmax.f32 %v1013_v9, 0.0 }
 0x550   : > { %v1040_v12 = vmax.f32 %v1015_v10, 0.0  ;;  %v1017_v13 = vpop.f32.mrb[11].mxu0  ;;  %v1220_v10 = vld [vmem:[%s1869_s10 + $0x20] sm:$0xff] }
 0x551   : > { %v1041_v15 = vmax.f32 %v1017_v13, 0.0 }
 0x552   : > { %v1058_v16 = vpack.c.bf16 %v1040_v12, %v1038_v11 }
 0x553   : > { %v1059_v17 = vpack.c.bf16 %v1041_v15, %v1039_v14 }
 0x555   : > { %v1021_v18 = vpop.f32.mrb[12].mxu0  ;;  %1147 = vmatprep.subr.bf16.mxu1 %v1059_v17  ;;  %v1221_v17 = vld [vmem:[%s1869_s10 + $0x28] sm:$0xff] }
 0x556   : > { %v1023_v19 = vpop.f32.mrb[13].mxu0  ;;  %1148 = vmatpush1.bf16.msra.mxu1 %v1058_v16  ;;  %v1042_v21 = vmax.f32 %v1021_v18, 0.0  ;;  %v1093_v16 = vpop.permute.xlu0 %1092 }
 0x557   : > { %v1025_v20 = vpop.f32.mrb[14].mxu0  ;;  %v1043_v24 = vmax.f32 %v1023_v19, 0.0  ;;  %v1232_v19 = vunpack.c.l.bf16 %v1220_v10 }
 0x558   : > { %v1044_v22 = vmax.f32 %v1025_v20, 0.0  ;;  %v1027_v23 = vpop.f32.mrb[15].mxu0 }
 0x559   : > { %v1045_v25 = vmax.f32 %v1027_v23, 0.0 }
 0x55a   : > { %v1060_v26 = vpack.c.bf16 %v1044_v22, %v1042_v21  ;;  %v1233_v22 = vunpack.c.h.bf16 %v1220_v10 }
 0x55b   : > { %v1061_v27 = vpack.c.bf16 %v1045_v25, %v1043_v24  ;;  %v1234_v25 = vunpack.c.l.bf16 %v1221_v17 }
 0x55d   : > { %1149 = vmatprep.subr.bf16.mxu1 %v1061_v27 }
 0x55e   : > { %1150 = vmatpush1.bf16.msra.mxu1 %v1060_v26 }
 0x561   : > { %1496 = vmatmul.mubr.msk.bf16.vlgmr.msra.gmra.mrb[0].mxu1 %vm1130_vm4, %v1644_v28  ;;  %v1235_v28 = vunpack.c.h.bf16 %v1221_v17 }
 0x562   : > { %1185 = vmatprep.mubr.bf16.mxu1 %v1747_v31 }
 0x569   : > { %1497 = vmatmul.mubr.msk.bf16.gmra.mrb[4].mxu1 %vm1130_vm4, %v1645_v29 }
 0x56a   : > { %1195 = vmatprep.mubr.bf16.mxu1 %v1747_v31 }
 0x571   : > { %1498 = vmatmul.mubr.msk.bf16.gmra.mrb[8].mxu1 %vm1130_vm4, %v1646_v30 }
 0x572   : > { %1205 = vmatprep.mubr.bf16.mxu1 %v1747_v31  ;;  %v1083_v31 = vpop.permute.xlu1 %1082 }
 0x576   : > { %v1088_v59 = vpop.permute.xlu1 %1087 }
 0x579   : > { %1499 = vmatmul.mubr.msk.bf16.gmra.mrb[12].mxu1 %vm1130_vm4, %v1647_v32 }
 0x57a   : > { %v1098_v13 = vpop.permute.xlu1 %1097 }
 0x634   : > { %v1177_v38 = vpop.f32.mrb[0].mxu1 }
 0x635   : > { %v1178_v40 = vadd.f32 %v1177_v38, %v1073_v33  ;;  %v1179_v41 = vpop.f32.mrb[1].mxu1 }
 0x636   : > { %v1180_v43 = vadd.f32 %v1179_v41, %v1073_v33  ;;  %v1181_v44 = vpop.f32.mrb[2].mxu1  ;;  %v1103_v33 = vpop.permute.xlu1 %1102  ;;  %v1223_v41 = vld [vmem:[%s1869_s10 + $0x38] sm:$0xff] }
 0x637   : > { %v1240_v46 = vadd.f32 %v1224_v37, %v1178_v40  ;;  %v1182_v47 = vadd.f32 %v1181_v44, %v1078_v34  ;;  %v1183_v48 = vpop.f32.mrb[3].mxu1 }
 0x638   : > { %v1241_v49 = vadd.f32 %v1225_v39, %v1180_v43  ;;  %v1184_v50 = vadd.f32 %v1183_v48, %v1078_v34  ;;  %v1238_v48 = vunpack.c.l.bf16 %v1223_v41 }
 0x639   : > { %v1256_v52 = vmax.f32 %v1240_v46, 0.0  ;;  %v1242_v53 = vadd.f32 %v1226_v42, %v1182_v47 }
 0x63a   : > { %v1257_v54 = vmax.f32 %v1241_v49, 0.0  ;;  %v1243_v55 = vadd.f32 %v1227_v45, %v1184_v50  ;;  %v1237_v45 = vunpack.c.h.bf16 %v1222_v36  ;;  %v1108_v49 = vpop.permute.xlu1 %1107 }
 0x63b   : > { %1272 = vst [vmem:[%s1874_s12] sm:$0xff] %v1256_v52  ;;  %v1258_v57 = vmax.f32 %v1242_v53, 0.0  ;;  %v1239_v52 = vunpack.c.h.bf16 %v1223_v41 }
 0x63c   : > { %1273 = vst [vmem:[%s1874_s12 + $0x8] sm:$0xff] %v1257_v54  ;;  %v1259_v60 = vmax.f32 %v1243_v55, 0.0  ;;  %v1187_v61 = vpop.f32.mrb[4].mxu1 }
 0x63d   : > { %1274 = vst [vmem:[%s1874_s12 + $0x10] sm:$0xff] %v1258_v57  ;;  %v1188_v63 = vadd.f32 %v1187_v61, %v1083_v31  ;;  %v1189_v0 = vpop.f32.mrb[5].mxu1 }
 0x63e   : > { %1275 = vst [vmem:[%s1874_s12 + $0x18] sm:$0xff] %v1259_v60  ;;  %v1190_v2 = vadd.f32 %v1189_v0, %v1083_v31  ;;  %v1191_v3 = vpop.f32.mrb[6].mxu1  ;;  %v1236_v31 = vunpack.c.l.bf16 %v1222_v36 }
 0x63f   : > { %v1244_v5 = vadd.f32 %v1228_v58, %v1188_v63  ;;  %v1192_v6 = vadd.f32 %v1191_v3, %v1088_v59  ;;  %v1193_v7 = vpop.f32.mrb[7].mxu1 }
 0x640   : > { %v1245_v8 = vadd.f32 %v1229_v62, %v1190_v2  ;;  %v1194_v9 = vadd.f32 %v1193_v7, %v1088_v59 }
 0x641   : > { %v1260_v11 = vmax.f32 %v1244_v5, 0.0  ;;  %v1246_v12 = vadd.f32 %v1230_v1, %v1192_v6 }
 0x642   : > { %v1261_v14 = vmax.f32 %v1245_v8, 0.0  ;;  %v1247_v15 = vadd.f32 %v1231_v4, %v1194_v9 }
 0x643   : > { %1276 = vst [vmem:[%s1874_s12 + $0x20] sm:$0xff] %v1260_v11  ;;  %v1262_v18 = vmax.f32 %v1246_v12, 0.0 }
 0x644   : > { %1277 = vst [vmem:[%s1874_s12 + $0x28] sm:$0xff] %v1261_v14  ;;  %v1263_v20 = vmax.f32 %v1247_v15, 0.0  ;;  %v1197_v21 = vpop.f32.mrb[8].mxu1 }
 0x645   : > { %1278 = vst [vmem:[%s1874_s12 + $0x30] sm:$0xff] %v1262_v18  ;;  %v1198_v23 = vadd.f32 %v1197_v21, %v1093_v16  ;;  %v1199_v24 = vpop.f32.mrb[9].mxu1 }
 0x646   : > { %1279 = vst [vmem:[%s1874_s12 + $0x38] sm:$0xff] %v1263_v20  ;;  %v1200_v26 = vadd.f32 %v1199_v24, %v1093_v16  ;;  %v1201_v27 = vpop.f32.mrb[10].mxu1 }
 0x647   : > { %v1248_v29 = vadd.f32 %v1232_v19, %v1198_v23  ;;  %v1202_v30 = vadd.f32 %v1201_v27, %v1098_v13  ;;  %v1203_v32 = vpop.f32.mrb[11].mxu1 }
 0x648   : > { %v1249_v34 = vadd.f32 %v1233_v22, %v1200_v26  ;;  %v1204_v35 = vadd.f32 %v1203_v32, %v1098_v13 }
 0x649   : > { %v1264_v37 = vmax.f32 %v1248_v29, 0.0  ;;  %v1250_v38 = vadd.f32 %v1234_v25, %v1202_v30 }
 0x64a   : > { %v1265_v39 = vmax.f32 %v1249_v34, 0.0  ;;  %v1251_v40 = vadd.f32 %v1235_v28, %v1204_v35 }
 0x64b   : > { %1280 = vst [vmem:[%s1874_s12 + $0x40] sm:$0xff] %v1264_v37  ;;  %v1266_v42 = vmax.f32 %v1250_v38, 0.0 }
 0x64c   : > { %1281 = vst [vmem:[%s1874_s12 + $0x48] sm:$0xff] %v1265_v39  ;;  %v1267_v43 = vmax.f32 %v1251_v40, 0.0  ;;  %v1207_v44 = vpop.f32.mrb[12].mxu1 }
 0x64d   : > { %1282 = vst [vmem:[%s1874_s12 + $0x50] sm:$0xff] %v1266_v42  ;;  %v1208_v46 = vadd.f32 %v1207_v44, %v1103_v33  ;;  %v1209_v47 = vpop.f32.mrb[13].mxu1 }
 0x64e   : > { %1283 = vst [vmem:[%s1874_s12 + $0x58] sm:$0xff] %v1267_v43  ;;  %v1210_v50 = vadd.f32 %v1209_v47, %v1103_v33  ;;  %v1211_v51 = vpop.f32.mrb[14].mxu1 }
 0x64f   : > { %v1252_v53 = vadd.f32 %v1236_v31, %v1208_v46  ;;  %v1212_v54 = vadd.f32 %v1211_v51, %v1108_v49  ;;  %v1213_v55 = vpop.f32.mrb[15].mxu1 }
 0x650   : > { %v1253_v56 = vadd.f32 %v1237_v45, %v1210_v50  ;;  %v1214_v57 = vadd.f32 %v1213_v55, %v1108_v49 }
 0x651   : > { %v1268_v58 = vmax.f32 %v1252_v53, 0.0  ;;  %v1254_v59 = vadd.f32 %v1238_v48, %v1212_v54 }
 0x652   : > { %v1269_v60 = vmax.f32 %v1253_v56, 0.0  ;;  %v1255_v61 = vadd.f32 %v1239_v52, %v1214_v57 }
 0x653   : > { %1284 = vst [vmem:[%s1874_s12 + $0x60] sm:$0xff] %v1268_v58  ;;  %v1270_v62 = vmax.f32 %v1254_v59, 0.0 }
 0x654   : > { %1285 = vst [vmem:[%s1874_s12 + $0x68] sm:$0xff] %v1269_v60  ;;  %v1271_v63 = vmax.f32 %v1255_v61, 0.0 }
 0x655   : > { %1286 = vst [vmem:[%s1874_s12 + $0x70] sm:$0xff] %v1270_v62 }
 0x656   : > { %1287 = vst [vmem:[%s1874_s12 + $0x78] sm:$0xff] %v1271_v63 }
 0x657 PF: > { %s1509_s10 = sshll.u32 %s1730_s28, 9  ;;  %s1326_s9 = sshll.u32 %s1876_s11, 4  ;;  %s2051_s9 = int_to_ptr.vmem [resolvable:$true] %s1326_s9 }
 0x658   : > { %s2048_s18 = scalar_lea.hbm %s2114_s7, %s1509_s10  ;;  %s2121_s15 = sand.u32 1, %s1718_s25  }
 0x659   : > { %s2055_s16 = scalar_lea.sflag [#allocation7], %s2121_s15  ;;  %s1648_s12 = scalar_lea.vmem %s2051_s9, 512 }
 0x65a   : > { %p1649_p5 = scmp.ne.s32.totalorder %s2051_s9, %s1648_s12  ;;  %s1748_s28 = smov [#allocation6]  }
 0x65b   : > { %s1652_s27 = sshll.u32 %s1748_s28, 4  ;;  %s1653_s27 = int_to_ptr.vmem [resolvable:$false] %s1652_s27 }
 0x65c   : > { %p1650_p6 = pnand %p1649_p5, %p1840_p3  ;;  %s1654_s19 = scalar_lea.vmem %s1653_s27, 1024 }
 0x65d   : > { %p1655_p8 = scmp.lt.s32.totalorder %s2051_s9, %s1653_s27  ;;  %p1656_p10 = scmp.lt.s32.totalorder %s1654_s19, %s1648_s12 }
 0x65e   : > { %p1651_p7 = pneg %p1650_p6 }
 0x65f   : > { %p1657_p11 = por %p1656_p10, %p1655_p8 }
 0x661   : > { %p1658_p12 = pnand %p1657_p11, %p1651_p7 }
 0x663   : > { %1661 = shalt.err (!%p1658_p12)
}
 0x664   : > { %s1662_s11 = scalar_lea.hbm %s2048_s18, 512  ;;  %s1666_s10 = scalar_lea.hbm %s2114_s7, 1024 }
 0x665   : > { %p1663_p13 = scmp.ne.s32.totalorder %s2048_s18, %s1662_s11  ;;  %p1667_p2 = scmp.lt.u32.totalorder %s2048_s18, %s2114_s7 }
 0x666   : > { %p1668_p4 = scmp.lt.u32.totalorder %s1666_s10, %s1662_s11  ;;  %p1670_p6 = scmp.lt.u32.totalorder %s1662_s11, %s2048_s18 }
 0x667   : > { %p1664_p0 = pnand %p1663_p13, %p1840_p3 }
 0x668   : > { %p1669_p5 = por %p1668_p4, %p1667_p2 }
 0x669   : > { %p1665_p1 = pneg %p1664_p0 }
 0x66a   : > { %p1671_p7 = por %p1670_p6, %p1669_p5 }
 0x66c   : > { %p1672_p8 = pnand %p1671_p7, %p1665_p1 }
 0x66e   : > { %1675 = shalt.err (!%p1672_p8)
}
 0x66f   : > { %s1749_s15 = smov 128   ;;  %s1750_s12 = smov 8  }
 0x670   : > { %1518 = dma.vmem_to_hbm [thread:$0]  (%p1840_p3), %s2051_s9, 512, %s2048_s18, %s2055_s16, %s1749_s15, %s1749_s15, %s1750_s12  }
 0x671 PF: > { %p1524_p10 = scmp.ge.s32.totalorder %s1742_s8, 2  ;;  %s1355_s28 = sand.u32 1, %s1714_s24  }
 0x672   : > { %s1356_s27 = scalar_lea.sflag [#allocation7], %s1355_s28 }
 0x673   : > { %p1521_p11 = pnand %p1524_p10, %p1850_p9 }
 0x675   : > { %1709 = dma.done.wait (!%p1521_p11), %s1356_s27, 512  }
 0x676   : > { %1711 = vsyncadd (!%p1521_p11), %s1356_s27, 4294966784  ;;  %s21_s8 = sadd.s32 1, %s1742_s8   ;;  %s2122_s13 = sld [smem:[#allocation9_spill]] }
 0x677   : > { %p18_p12 = scmp.ge.s32.totalorder %s21_s8, 10   ;;  %s2123_s18 = sld [smem:[#allocation10_spill]] }
 0x678   : > { %s2124_s24 = smov %s1718_s25  ;;  %s2125_s25 = smov %s1722_s26 }
 0x679   : > { %s2126_s26 = smov %s1858_s17  ;;  %s2127_s27 = smov %s1734_s29 }
 0x67a   : > { %s2128_s28 = smov %s1738_s30  ;;  %20 = sbr.rel (!%p18_p12) target bundleno = 5 (0x5), region = 123 }
 0x67c   : > { %s2129_s29 = smov %s2122_s13 }
 0x67d   : > { %s2130_s30 = smov %s2123_s18 }
 0x681   :  { %1361 = vsyncpa [#allocation7], 1 }
 0x682   :  { %1363 = vsyncpa [#allocation7 + $0x1], 1 }

</bundles_post_ra>
